<compile_context>
chip_gen: v6e
topology: v6e:2x2x1
jax: 0.10.0
libtpu: 0.0.40
codegen_flags: <defaults>
</compile_context>

<pallas_src>
import functools

import jax
import jax.numpy as jnp
import numpy as np
from jax.experimental import pallas as pl
from jax.experimental.pallas import tpu as pltpu

BN_EPS = 1e-5
LANE = 128
KH = KW = 3


def _round_up(x, m):
    return (x + m - 1) // m * m


def _pick_tile_h(H, W, cin_p, cout_p, itemsize,
                 vmem_budget=8 * 1024 * 1024, max_rows=1024):
    """Largest divisor of H whose per-step working set fits a conservative VMEM budget
    (sized so double-buffered tiles stay well under v7x's 32 MiB scoped VMEM)."""
    best = 1
    for th in range(1, H + 1):
        if H % th:
            continue
        rows = th * W
        if rows > max_rows:
            continue
        in_b = (th + 2) * (W + 2) * cin_p * itemsize      # haloed input tile
        conv_b = rows * cout_p * 4                        # f32 conv-out tile
        out_b = rows * cout_p * itemsize                  # final output tile
        patch_b = rows * KH * KW * cin_p * itemsize       # im2col scratch
        w_b = KH * KW * cin_p * cout_p * itemsize
        total = 2 * (in_b + conv_b + out_b) + patch_b + w_b   # x2: double-buffering
        if total <= vmem_budget:
            best = th
    return best


def _conv_im2col_kernel(xt_ref, w_ref, b_ref, y_ref, stats_ref, patch_ref):
    """Pass 1: conv(3x3, stride 1, pad 1) + bias for one (batch, row-tile) block.

    xt_ref   : (TH+2, W+2, Cin_pad)   haloed input tile (model dtype)
    w_ref    : (9*Cin_pad, Cout_pad)  im2col weights (model dtype)
    b_ref    : (1, Cout_pad)          conv bias (f32)
    y_ref    : (TH, W, Cout_pad)      conv+bias output (f32, pre-BN)
    stats_ref: (2, Cout_pad)          per-tile [sum, sum_sq] over rows (f32)
    patch_ref: (TH*W, 9*Cin_pad)      im2col VMEM scratch (model dtype)
    """
    TH, W, cout_p = y_ref.shape
    cin_p = xt_ref.shape[-1]
    TM = TH * W

    # Build the im2col patch buffer with 9 lane-aligned column writes
    # (Cin_pad is a multiple of 128, so every column block is vreg-aligned).
    for kh in range(KH):
        for kw in range(KW):
            t = kh * KW + kw
            patch_ref[:, t * cin_p:(t + 1) * cin_p] = (
                xt_ref[kh:kh + TH, kw:kw + W, :].reshape(TM, cin_p))

    # Single MXU matmul with K = 9*Cin_pad; f32 accumulation via preferred_element_type
    # (operands are NOT force-cast, so bf16 models run at full MXU rate).
    acc = jnp.dot(patch_ref[...], w_ref[...], preferred_element_type=jnp.float32)
    acc = acc + b_ref[...]

    y_ref[...] = acc.reshape(TH, W, cout_p)

    # Partial BatchNorm statistics for this tile (cross-tile reduction done in JAX).
    stats_ref[0:1, :] = jnp.sum(acc, axis=0, keepdims=True)
    stats_ref[1:2, :] = jnp.sum(acc * acc, axis=0, keepdims=True)


def _bn_relu_kernel(y_ref, scale_ref, shift_ref, o_ref):
    """Pass 2: folded BatchNorm (one FMA per element) + ReLU."""
    scale = scale_ref[...].reshape(1, 1, -1)
    shift = shift_ref[...].reshape(1, 1, -1)
    o_ref[...] = jnp.maximum(y_ref[...] * scale + shift, 0.0).astype(o_ref.dtype)


@functools.partial(jax.jit, static_argnames=("padding",))
def conv_block_forward(x_nchw, w_oihw, bias, gamma, beta, padding=1):
    """Matches conv_block(in_ch, out_ch, 3, 1, 1, leaky=False).forward with
    BatchNorm2d in its default (training) mode (batch statistics)."""
    N, Cin, H, W = x_nchw.shape
    Cout = w_oihw.shape[0]
    dtype = x_nchw.dtype
    itemsize = jnp.dtype(dtype).itemsize

    cin_p = _round_up(Cin, LANE)     # lane-aligned im2col K blocks
    cout_p = _round_up(Cout, LANE)   # lane-dense output stores
    th = _pick_tile_h(H, W, cin_p, cout_p, itemsize)
    n_t = H // th
    grid = (N, n_t)
    M = N * H * W

    # ---- glue: NCHW -> NHWC, channel pad, zero pad, haloed H-row tiles ----
    # TODO(synk): fold the zero-padding / halo construction into the kernel via manual
    # DMA from an un-padded HBM ref to drop this extra HBM pass.
    x_nhwc = jnp.transpose(x_nchw, (0, 2, 3, 1))
    x_nhwc = jnp.pad(x_nhwc, ((0, 0), (0, 0), (0, 0), (0, cin_p - Cin)))
    xp = jnp.pad(x_nhwc, ((0, 0), (padding, padding), (padding, padding), (0, 0)))
    rows = jnp.arange(n_t)[:, None] * th + jnp.arange(th + 2 * padding)[None, :]
    x_tiles = xp[:, rows]                             # (N, n_t, th+2, W+2, cin_p)

    # im2col weights: (KH, KW, Cin_pad, Cout_pad) -> (9*cin_p, cout_p); pads are zero.
    w_k = jnp.transpose(w_oihw, (2, 3, 1, 0))
    w_k = jnp.pad(w_k, ((0, 0), (0, 0), (0, cin_p - Cin), (0, cout_p - Cout)))
    w2d = w_k.reshape(KH * KW * cin_p, cout_p).astype(dtype)

    b2d = jnp.pad(bias.astype(jnp.float32), (0, cout_p - Cout)).reshape(1, cout_p)

    # ----------------- pass 1: conv + bias, per-tile BN partial sums -----------------
    cost1 = pl.CostEstimate(
        flops=2 * M * KH * KW * cin_p * cout_p,
        transcendentals=0,
        bytes_accessed=(x_tiles.size * itemsize + w2d.size * itemsize
                        + 4 * (M * cout_p + N * n_t * 2 * cout_p)))
    y_conv, stats = pl.pallas_call(
        _conv_im2col_kernel,
        out_shape=(
            jax.ShapeDtypeStruct((N, n_t, th, W, cout_p), jnp.float32),
            jax.ShapeDtypeStruct((N, n_t, 2, cout_p), jnp.float32),
        ),
        grid=grid,
        in_specs=[
            pl.BlockSpec((None, None, th + 2 * padding, W + 2 * padding, cin_p),
                         lambda n, i: (n, i, 0, 0, 0)),
            pl.BlockSpec((KH * KW * cin_p, cout_p), lambda n, i: (0, 0)),
            pl.BlockSpec((1, cout_p), lambda n, i: (0, 0)),
        ],
        out_specs=(
            pl.BlockSpec((None, None, th, W, cout_p), lambda n, i: (n, i, 0, 0, 0)),
            pl.BlockSpec((None, None, 2, cout_p), lambda n, i: (n, i, 0, 0)),
        ),
        scratch_shapes=[pltpu.VMEM((th * W, KH * KW * cin_p), dtype)],
        compiler_params=pltpu.CompilerParams(
            dimension_semantics=("parallel", "parallel"),
            vmem_limit_bytes=32 * 1024 * 1024),
        cost_estimate=cost1,
    )(x_tiles, w2d, b2d)

    # ------- tiny cross-tile reduction + BN folding (plain JAX, O(Cout) work) -------
    sums = jnp.sum(stats[:, :, 0, :], axis=(0, 1))
    sumsq = jnp.sum(stats[:, :, 1, :], axis=(0, 1))
    mean = sums / M
    # Biased variance (train-mode BN). E[x^2]-E[x]^2 in f32; clamp for safety.
    var = jnp.maximum(sumsq / M - mean * mean, 0.0)
    gamma_p = jnp.pad(gamma.astype(jnp.float32), (0, cout_p - Cout))
    beta_p = jnp.pad(beta.astype(jnp.float32), (0, cout_p - Cout))
    scale = gamma_p * jax.lax.rsqrt(var + BN_EPS)
    shift = beta_p - mean * scale
    scale = scale.reshape(1, cout_p)
    shift = shift.reshape(1, cout_p)

    # ----------------- pass 2: fused scale + shift + ReLU -----------------
    cost2 = pl.CostEstimate(
        flops=3 * M * cout_p, transcendentals=0,
        bytes_accessed=4 * M * cout_p + itemsize * M * cout_p)
    out_t = pl.pallas_call(
        _bn_relu_kernel,
        out_shape=jax.ShapeDtypeStruct((N, n_t, th, W, cout_p), dtype),
        grid=grid,
        in_specs=[
            pl.BlockSpec((None, None, th, W, cout_p), lambda n, i: (n, i, 0, 0, 0)),
            pl.BlockSpec((1, cout_p), lambda n, i: (0, 0)),
            pl.BlockSpec((1, cout_p), lambda n, i: (0, 0)),
        ],
        out_specs=pl.BlockSpec((None, None, th, W, cout_p),
                               lambda n, i: (n, i, 0, 0, 0)),
        compiler_params=pltpu.CompilerParams(
            dimension_semantics=("parallel", "parallel"),
            vmem_limit_bytes=32 * 1024 * 1024),
        cost_estimate=cost2,
    )(y_conv, scale, shift)

    # ---- glue: un-tile, crop channel padding, back to NCHW ----
    out_nhwc = out_t.reshape(N, H, W, cout_p)[:, :, :, :Cout]
    return jnp.transpose(out_nhwc, (0, 3, 1, 2))


def _reference(x_nchw, w_oihw, bias, gamma, beta, padding=1):
    """Pure-JAX reference (conv + train-mode BN + ReLU)."""
    y = jax.lax.conv_general_dilated(
        x_nchw.astype(jnp.float32), w_oihw.astype(jnp.float32),
        window_strides=(1, 1), padding=[(padding, padding), (padding, padding)],
        dimension_numbers=("NCHW", "OIHW", "NCHW"))
    y = y + bias.reshape(1, -1, 1, 1)
    mean = jnp.mean(y, axis=(0, 2, 3), keepdims=True)
    var = jnp.mean((y - mean) ** 2, axis=(0, 2, 3), keepdims=True)
    y = (y - mean) * jax.lax.rsqrt(var + BN_EPS)
    y = y * gamma.reshape(1, -1, 1, 1) + beta.reshape(1, -1, 1, 1)
    return jnp.maximum(y, 0.0)


if __name__ == "__main__":
    # Small shapes: batch=2, in_ch=4, out_ch=8, spatial=16x16.
    N, Cin, Cout, H, W = 2, 4, 8, 16, 16
    key = jax.random.PRNGKey(0)
    kx, kw, kb = jax.random.split(key, 3)

    x = jax.random.normal(kx, (N, Cin, H, W), dtype=jnp.float32)
    fan_in = Cin * 3 * 3
    bound = 1.0 / np.sqrt(fan_in)
    w = jax.random.uniform(kw, (Cout, Cin, 3, 3), jnp.float32, -bound, bound)
    b = jax.random.uniform(kb, (Cout,), jnp.float32, -bound, bound)
    gamma = jnp.ones((Cout,), jnp.float32)   # PyTorch BN init
    beta = jnp.zeros((Cout,), jnp.float32)

    # NOTE: running_mean / running_var of BatchNorm2d are not updated (forward-only,
    # train-mode batch statistics), matching the reference module's forward output.
    out = jax.block_until_ready(conv_block_forward(x, w, b, gamma, beta))
    ref = jax.block_until_ready(_reference(x, w, b, gamma, beta))
    np.testing.assert_allclose(np.asarray(out), np.asarray(ref), atol=1e-4, rtol=1e-4)

    print("KERNEL_OK")
</pallas_src>

<mosaic_0001>
module attributes {stable_mosaic.version = 11 : i64} {
  func.func @_conv_im2col_kernel(%arg0: i32, %arg1: i32, %arg2: memref<1x1x18x18x128xf32, #tpu.memory_space<vmem>>, %arg3: memref<1152x128xf32, #tpu.memory_space<vmem>>, %arg4: memref<1x128xf32, #tpu.memory_space<vmem>>, %arg5: memref<1x1x16x16x128xf32, #tpu.memory_space<vmem>>, %arg6: memref<1x1x2x128xf32, #tpu.memory_space<vmem>>, %arg7: memref<256x1152xf32, #tpu.memory_space<vmem>>) attributes {dimension_semantics = [#tpu.dimension_semantics<parallel>, #tpu.dimension_semantics<parallel>], iteration_bounds = array<i64: 2, 1>, scalar_prefetch = 0 : i64, scratch_operands = 1 : i64, tpu.core_type = #tpu.core_type<tc>, window_params = [{transform_indices = @transform_0, window_bounds = array<i64: 1, 1, 18, 18, 128>}, {pipeline_mode = #tpu.pipeline_mode<synchronous>, transform_indices = @transform_1, window_bounds = array<i64: 1152, 128>}, {pipeline_mode = #tpu.pipeline_mode<synchronous>, transform_indices = @transform_2, window_bounds = array<i64: 1, 128>}, {transform_indices = @transform_3, window_bounds = array<i64: 1, 1, 16, 16, 128>}, {transform_indices = @transform_4, window_bounds = array<i64: 1, 1, 2, 128>}]} {
    %c0 = arith.constant 0 : index
    %c0_0 = arith.constant 0 : index
    %c0_1 = arith.constant 0 : index
    %c0_2 = arith.constant 0 : index
    %c0_3 = arith.constant 0 : index
    %0 = vector.load %arg2[%c0, %c0_0, %c0_1, %c0_2, %c0_3] : memref<1x1x18x18x128xf32, #tpu.memory_space<vmem>>, vector<1x1x16x16x128xf32>
    %1 = vector.shape_cast %0 : vector<1x1x16x16x128xf32> to vector<16x16x128xf32>
    %2 = vector.shape_cast %1 : vector<16x16x128xf32> to vector<256x128xf32>
    %c0_4 = arith.constant 0 : index
    %c0_5 = arith.constant 0 : index
    %3 = vector.load %arg7[%c0_4, %c0_5] : memref<256x1152xf32, #tpu.memory_space<vmem>>, vector<256x128xf32>
    tpu.vector_store %arg7[%c0_4, %c0_5], %2 {strides = array<i32>} : memref<256x1152xf32, #tpu.memory_space<vmem>>, vector<256x128xf32>,
    %c0_6 = arith.constant 0 : index
    %c0_7 = arith.constant 0 : index
    %c0_8 = arith.constant 0 : index
    %c1 = arith.constant 1 : index
    %c0_9 = arith.constant 0 : index
    %4 = vector.load %arg2[%c0_6, %c0_7, %c0_8, %c1, %c0_9] : memref<1x1x18x18x128xf32, #tpu.memory_space<vmem>>, vector<1x1x16x16x128xf32>
    %5 = vector.shape_cast %4 : vector<1x1x16x16x128xf32> to vector<16x16x128xf32>
    %6 = vector.shape_cast %5 : vector<16x16x128xf32> to vector<256x128xf32>
    %c0_10 = arith.constant 0 : index
    %c128 = arith.constant 128 : index
    %7 = vector.load %arg7[%c0_10, %c128] : memref<256x1152xf32, #tpu.memory_space<vmem>>, vector<256x128xf32>
    tpu.vector_store %arg7[%c0_10, %c128], %6 {strides = array<i32>} : memref<256x1152xf32, #tpu.memory_space<vmem>>, vector<256x128xf32>,
    %c0_11 = arith.constant 0 : index
    %c0_12 = arith.constant 0 : index
    %c0_13 = arith.constant 0 : index
    %c2 = arith.constant 2 : index
    %c0_14 = arith.constant 0 : index
    %8 = vector.load %arg2[%c0_11, %c0_12, %c0_13, %c2, %c0_14] : memref<1x1x18x18x128xf32, #tpu.memory_space<vmem>>, vector<1x1x16x16x128xf32>
    %9 = vector.shape_cast %8 : vector<1x1x16x16x128xf32> to vector<16x16x128xf32>
    %10 = vector.shape_cast %9 : vector<16x16x128xf32> to vector<256x128xf32>
    %c0_15 = arith.constant 0 : index
    %c256 = arith.constant 256 : index
    %11 = vector.load %arg7[%c0_15, %c256] : memref<256x1152xf32, #tpu.memory_space<vmem>>, vector<256x128xf32>
    tpu.vector_store %arg7[%c0_15, %c256], %10 {strides = array<i32>} : memref<256x1152xf32, #tpu.memory_space<vmem>>, vector<256x128xf32>,
    %c0_16 = arith.constant 0 : index
    %c0_17 = arith.constant 0 : index
    %c1_18 = arith.constant 1 : index
    %c0_19 = arith.constant 0 : index
    %c0_20 = arith.constant 0 : index
    %12 = vector.load %arg2[%c0_16, %c0_17, %c1_18, %c0_19, %c0_20] : memref<1x1x18x18x128xf32, #tpu.memory_space<vmem>>, vector<1x1x16x16x128xf32>
    %13 = vector.shape_cast %12 : vector<1x1x16x16x128xf32> to vector<16x16x128xf32>
    %14 = vector.shape_cast %13 : vector<16x16x128xf32> to vector<256x128xf32>
    %c0_21 = arith.constant 0 : index
    %c384 = arith.constant 384 : index
    %15 = vector.load %arg7[%c0_21, %c384] : memref<256x1152xf32, #tpu.memory_space<vmem>>, vector<256x128xf32>
    tpu.vector_store %arg7[%c0_21, %c384], %14 {strides = array<i32>} : memref<256x1152xf32, #tpu.memory_space<vmem>>, vector<256x128xf32>,
    %c0_22 = arith.constant 0 : index
    %c0_23 = arith.constant 0 : index
    %c1_24 = arith.constant 1 : index
    %c1_25 = arith.constant 1 : index
    %c0_26 = arith.constant 0 : index
    %16 = vector.load %arg2[%c0_22, %c0_23, %c1_24, %c1_25, %c0_26] : memref<1x1x18x18x128xf32, #tpu.memory_space<vmem>>, vector<1x1x16x16x128xf32>
    %17 = vector.shape_cast %16 : vector<1x1x16x16x128xf32> to vector<16x16x128xf32>
    %18 = vector.shape_cast %17 : vector<16x16x128xf32> to vector<256x128xf32>
    %c0_27 = arith.constant 0 : index
    %c512 = arith.constant 512 : index
    %19 = vector.load %arg7[%c0_27, %c512] : memref<256x1152xf32, #tpu.memory_space<vmem>>, vector<256x128xf32>
    tpu.vector_store %arg7[%c0_27, %c512], %18 {strides = array<i32>} : memref<256x1152xf32, #tpu.memory_space<vmem>>, vector<256x128xf32>,
    %c0_28 = arith.constant 0 : index
    %c0_29 = arith.constant 0 : index
    %c1_30 = arith.constant 1 : index
    %c2_31 = arith.constant 2 : index
    %c0_32 = arith.constant 0 : index
    %20 = vector.load %arg2[%c0_28, %c0_29, %c1_30, %c2_31, %c0_32] : memref<1x1x18x18x128xf32, #tpu.memory_space<vmem>>, vector<1x1x16x16x128xf32>
    %21 = vector.shape_cast %20 : vector<1x1x16x16x128xf32> to vector<16x16x128xf32>
    %22 = vector.shape_cast %21 : vector<16x16x128xf32> to vector<256x128xf32>
    %c0_33 = arith.constant 0 : index
    %c640 = arith.constant 640 : index
    %23 = vector.load %arg7[%c0_33, %c640] : memref<256x1152xf32, #tpu.memory_space<vmem>>, vector<256x128xf32>
    tpu.vector_store %arg7[%c0_33, %c640], %22 {strides = array<i32>} : memref<256x1152xf32, #tpu.memory_space<vmem>>, vector<256x128xf32>,
    %c0_34 = arith.constant 0 : index
    %c0_35 = arith.constant 0 : index
    %c2_36 = arith.constant 2 : index
    %c0_37 = arith.constant 0 : index
    %c0_38 = arith.constant 0 : index
    %24 = vector.load %arg2[%c0_34, %c0_35, %c2_36, %c0_37, %c0_38] : memref<1x1x18x18x128xf32, #tpu.memory_space<vmem>>, vector<1x1x16x16x128xf32>
    %25 = vector.shape_cast %24 : vector<1x1x16x16x128xf32> to vector<16x16x128xf32>
    %26 = vector.shape_cast %25 : vector<16x16x128xf32> to vector<256x128xf32>
    %c0_39 = arith.constant 0 : index
    %c768 = arith.constant 768 : index
    %27 = vector.load %arg7[%c0_39, %c768] : memref<256x1152xf32, #tpu.memory_space<vmem>>, vector<256x128xf32>
    tpu.vector_store %arg7[%c0_39, %c768], %26 {strides = array<i32>} : memref<256x1152xf32, #tpu.memory_space<vmem>>, vector<256x128xf32>,
    %c0_40 = arith.constant 0 : index
    %c0_41 = arith.constant 0 : index
    %c2_42 = arith.constant 2 : index
    %c1_43 = arith.constant 1 : index
    %c0_44 = arith.constant 0 : index
    %28 = vector.load %arg2[%c0_40, %c0_41, %c2_42, %c1_43, %c0_44] : memref<1x1x18x18x128xf32, #tpu.memory_space<vmem>>, vector<1x1x16x16x128xf32>
    %29 = vector.shape_cast %28 : vector<1x1x16x16x128xf32> to vector<16x16x128xf32>
    %30 = vector.shape_cast %29 : vector<16x16x128xf32> to vector<256x128xf32>
    %c0_45 = arith.constant 0 : index
    %c896 = arith.constant 896 : index
    %31 = vector.load %arg7[%c0_45, %c896] : memref<256x1152xf32, #tpu.memory_space<vmem>>, vector<256x128xf32>
    tpu.vector_store %arg7[%c0_45, %c896], %30 {strides = array<i32>} : memref<256x1152xf32, #tpu.memory_space<vmem>>, vector<256x128xf32>,
    %c0_46 = arith.constant 0 : index
    %c0_47 = arith.constant 0 : index
    %c2_48 = arith.constant 2 : index
    %c2_49 = arith.constant 2 : index
    %c0_50 = arith.constant 0 : index
    %32 = vector.load %arg2[%c0_46, %c0_47, %c2_48, %c2_49, %c0_50] : memref<1x1x18x18x128xf32, #tpu.memory_space<vmem>>, vector<1x1x16x16x128xf32>
    %33 = vector.shape_cast %32 : vector<1x1x16x16x128xf32> to vector<16x16x128xf32>
    %34 = vector.shape_cast %33 : vector<16x16x128xf32> to vector<256x128xf32>
    %c0_51 = arith.constant 0 : index
    %c1024 = arith.constant 1024 : index
    %35 = vector.load %arg7[%c0_51, %c1024] : memref<256x1152xf32, #tpu.memory_space<vmem>>, vector<256x128xf32>
    tpu.vector_store %arg7[%c0_51, %c1024], %34 {strides = array<i32>} : memref<256x1152xf32, #tpu.memory_space<vmem>>, vector<256x128xf32>,
    %c0_52 = arith.constant 0 : index
    %c0_53 = arith.constant 0 : index
    %36 = vector.load %arg7[%c0_52, %c0_53] : memref<256x1152xf32, #tpu.memory_space<vmem>>, vector<256x1152xf32>
    %c0_54 = arith.constant 0 : index
    %c0_55 = arith.constant 0 : index
    %37 = vector.load %arg3[%c0_54, %c0_55] : memref<1152x128xf32, #tpu.memory_space<vmem>>, vector<1152x128xf32>
    %cst = arith.constant dense<0.000000e+00> : vector<256x128xf32>
    %38 = tpu.matmul %36, %37, %cst {dimension_numbers = #tpu.dot_dimension_numbers<[1], [0], [0], [1], [0, 0, 1, 1], [], []>} : vector<256x1152xf32>, vector<1152x128xf32>, vector<256x128xf32> -> vector<256x128xf32>
    %c0_56 = arith.constant 0 : index
    %c0_57 = arith.constant 0 : index
    %39 = vector.load %arg4[%c0_56, %c0_57] : memref<1x128xf32, #tpu.memory_space<vmem>>, vector<1x128xf32>
    %40 = vector.broadcast %39 : vector<1x128xf32> to vector<256x128xf32>
    %41 = arith.addf %38, %40 : vector<256x128xf32>
    %42 = vector.shape_cast %41 : vector<256x128xf32> to vector<16x16x128xf32>
    %c0_58 = arith.constant 0 : index
    %c0_59 = arith.constant 0 : index
    %c0_60 = arith.constant 0 : index
    %c0_61 = arith.constant 0 : index
    %c0_62 = arith.constant 0 : index
    %43 = vector.load %arg5[%c0_58, %c0_59, %c0_60, %c0_61, %c0_62] : memref<1x1x16x16x128xf32, #tpu.memory_space<vmem>>, vector<1x1x16x16x128xf32>
    %44 = vector.shape_cast %43 : vector<1x1x16x16x128xf32> to vector<16x16x128xf32>
    %45 = vector.shape_cast %42 : vector<16x16x128xf32> to vector<1x1x16x16x128xf32>
    tpu.vector_store %arg5[%c0_58, %c0_59, %c0_60, %c0_61, %c0_62], %45 {strides = array<i32>} : memref<1x1x16x16x128xf32, #tpu.memory_space<vmem>>, vector<1x1x16x16x128xf32>,
    %cst_63 = arith.constant dense<0.000000e+00> : vector<128xf32>
    %46 = vector.multi_reduction <add>, %41, %cst_63 [0] : vector<256x128xf32> to vector<128xf32>
    %47 = vector.shape_cast %46 : vector<128xf32> to vector<1x128xf32>
    %c0_64 = arith.constant 0 : index
    %c0_65 = arith.constant 0 : index
    %c0_66 = arith.constant 0 : index
    %c0_67 = arith.constant 0 : index
    %48 = vector.load %arg6[%c0_64, %c0_65, %c0_66, %c0_67] : memref<1x1x2x128xf32, #tpu.memory_space<vmem>>, vector<1x1x1x128xf32>
    %49 = vector.shape_cast %48 : vector<1x1x1x128xf32> to vector<1x128xf32>
    %50 = vector.shape_cast %47 : vector<1x128xf32> to vector<1x1x1x128xf32>
    tpu.vector_store %arg6[%c0_64, %c0_65, %c0_66, %c0_67], %50 {strides = array<i32>} : memref<1x1x2x128xf32, #tpu.memory_space<vmem>>, vector<1x1x1x128xf32>,
    %51 = arith.mulf %41, %41 : vector<256x128xf32>
    %cst_68 = arith.constant dense<0.000000e+00> : vector<128xf32>
    %52 = vector.multi_reduction <add>, %51, %cst_68 [0] : vector<256x128xf32> to vector<128xf32>
    %53 = vector.shape_cast %52 : vector<128xf32> to vector<1x128xf32>
    %c0_69 = arith.constant 0 : index
    %c0_70 = arith.constant 0 : index
    %c1_71 = arith.constant 1 : index
    %c0_72 = arith.constant 0 : index
    %54 = vector.load %arg6[%c0_69, %c0_70, %c1_71, %c0_72] : memref<1x1x2x128xf32, #tpu.memory_space<vmem>>, vector<1x1x1x128xf32>
    %55 = vector.shape_cast %54 : vector<1x1x1x128xf32> to vector<1x128xf32>
    %56 = vector.shape_cast %53 : vector<1x128xf32> to vector<1x1x1x128xf32>
    tpu.vector_store %arg6[%c0_69, %c0_70, %c1_71, %c0_72], %56 {strides = array<i32>} : memref<1x1x2x128xf32, #tpu.memory_space<vmem>>, vector<1x1x1x128xf32>,
    return
  }
  func.func @transform_0(%arg0: i32, %arg1: i32) -> (i32, i32, i32, i32, i32) {
    %c0_i32 = arith.constant 0 : i32
    %c0_i32_0 = arith.constant 0 : i32
    %c0_i32_1 = arith.constant 0 : i32
    %c0_i32_2 = arith.constant 0 : i32
    return %arg0, %arg1, %c0_i32, %c0_i32_0, %c0_i32_1 : i32, i32, i32, i32, i32
  }
  func.func @transform_1(%arg0: i32, %arg1: i32) -> (i32, i32) {
    %c0_i32 = arith.constant 0 : i32
    %c0_i32_0 = arith.constant 0 : i32
    %c0_i32_1 = arith.constant 0 : i32
    return %c0_i32, %c0_i32_0 : i32, i32
  }
  func.func @transform_2(%arg0: i32, %arg1: i32) -> (i32, i32) {
    %c0_i32 = arith.constant 0 : i32
    %c0_i32_0 = arith.constant 0 : i32
    %c0_i32_1 = arith.constant 0 : i32
    return %c0_i32, %c0_i32_0 : i32, i32
  }
  func.func @transform_3(%arg0: i32, %arg1: i32) -> (i32, i32, i32, i32, i32) {
    %c0_i32 = arith.constant 0 : i32
    %c0_i32_0 = arith.constant 0 : i32
    %c0_i32_1 = arith.constant 0 : i32
    %c0_i32_2 = arith.constant 0 : i32
    return %arg0, %arg1, %c0_i32, %c0_i32_0, %c0_i32_1 : i32, i32, i32, i32, i32
  }
  func.func @transform_4(%arg0: i32, %arg1: i32) -> (i32, i32, i32, i32) {
    %c0_i32 = arith.constant 0 : i32
    %c0_i32_0 = arith.constant 0 : i32
    %c0_i32_1 = arith.constant 0 : i32
    return %arg0, %arg1, %c0_i32, %c0_i32_0 : i32, i32, i32, i32
  }
}

module attributes {stable_mosaic.version = 11 : i64} {
  func.func @_bn_relu_kernel(%arg0: i32, %arg1: i32, %arg2: memref<1x1x16x16x128xf32, #tpu.memory_space<vmem>>, %arg3: memref<1x128xf32, #tpu.memory_space<vmem>>, %arg4: memref<1x128xf32, #tpu.memory_space<vmem>>, %arg5: memref<1x1x16x16x128xf32, #tpu.memory_space<vmem>>) attributes {dimension_semantics = [#tpu.dimension_semantics<parallel>, #tpu.dimension_semantics<parallel>], iteration_bounds = array<i64: 2, 1>, scalar_prefetch = 0 : i64, scratch_operands = 0 : i64, tpu.core_type = #tpu.core_type<tc>, window_params = [{transform_indices = @transform_0, window_bounds = array<i64: 1, 1, 16, 16, 128>}, {pipeline_mode = #tpu.pipeline_mode<synchronous>, transform_indices = @transform_1, window_bounds = array<i64: 1, 128>}, {pipeline_mode = #tpu.pipeline_mode<synchronous>, transform_indices = @transform_2, window_bounds = array<i64: 1, 128>}, {transform_indices = @transform_3, window_bounds = array<i64: 1, 1, 16, 16, 128>}]} {
    %c0 = arith.constant 0 : index
    %c0_0 = arith.constant 0 : index
    %0 = vector.load %arg3[%c0, %c0_0] : memref<1x128xf32, #tpu.memory_space<vmem>>, vector<1x128xf32>
    %1 = vector.shape_cast %0 : vector<1x128xf32> to vector<1x1x128xf32>
    %c0_1 = arith.constant 0 : index
    %c0_2 = arith.constant 0 : index
    %2 = vector.load %arg4[%c0_1, %c0_2] : memref<1x128xf32, #tpu.memory_space<vmem>>, vector<1x128xf32>
    %3 = vector.shape_cast %2 : vector<1x128xf32> to vector<1x1x128xf32>
    %c0_3 = arith.constant 0 : index
    %c0_4 = arith.constant 0 : index
    %c0_5 = arith.constant 0 : index
    %c0_6 = arith.constant 0 : index
    %c0_7 = arith.constant 0 : index
    %4 = vector.load %arg2[%c0_3, %c0_4, %c0_5, %c0_6, %c0_7] : memref<1x1x16x16x128xf32, #tpu.memory_space<vmem>>, vector<1x1x16x16x128xf32>
    %5 = vector.shape_cast %4 : vector<1x1x16x16x128xf32> to vector<16x16x128xf32>
    %6 = vector.broadcast %1 : vector<1x1x128xf32> to vector<16x16x128xf32>
    %7 = arith.mulf %5, %6 : vector<16x16x128xf32>
    %8 = vector.broadcast %3 : vector<1x1x128xf32> to vector<16x16x128xf32>
    %9 = arith.addf %7, %8 : vector<16x16x128xf32>
    %cst = arith.constant 0.000000e+00 : f32
    %10 = vector.broadcast %cst : f32 to vector<16x16x128xf32>
    %11 = arith.maximumf %9, %10 : vector<16x16x128xf32>
    %c0_8 = arith.constant 0 : index
    %c0_9 = arith.constant 0 : index
    %c0_10 = arith.constant 0 : index
    %c0_11 = arith.constant 0 : index
    %c0_12 = arith.constant 0 : index
    %12 = vector.load %arg5[%c0_8, %c0_9, %c0_10, %c0_11, %c0_12] : memref<1x1x16x16x128xf32, #tpu.memory_space<vmem>>, vector<1x1x16x16x128xf32>
    %13 = vector.shape_cast %12 : vector<1x1x16x16x128xf32> to vector<16x16x128xf32>
    %14 = vector.shape_cast %11 : vector<16x16x128xf32> to vector<1x1x16x16x128xf32>
    tpu.vector_store %arg5[%c0_8, %c0_9, %c0_10, %c0_11, %c0_12], %14 {strides = array<i32>} : memref<1x1x16x16x128xf32, #tpu.memory_space<vmem>>, vector<1x1x16x16x128xf32>,
    return
  }
  func.func @transform_0(%arg0: i32, %arg1: i32) -> (i32, i32, i32, i32, i32) {
    %c0_i32 = arith.constant 0 : i32
    %c0_i32_0 = arith.constant 0 : i32
    %c0_i32_1 = arith.constant 0 : i32
    %c0_i32_2 = arith.constant 0 : i32
    return %arg0, %arg1, %c0_i32, %c0_i32_0, %c0_i32_1 : i32, i32, i32, i32, i32
  }
  func.func @transform_1(%arg0: i32, %arg1: i32) -> (i32, i32) {
    %c0_i32 = arith.constant 0 : i32
    %c0_i32_0 = arith.constant 0 : i32
    %c0_i32_1 = arith.constant 0 : i32
    return %c0_i32, %c0_i32_0 : i32, i32
  }
  func.func @transform_2(%arg0: i32, %arg1: i32) -> (i32, i32) {
    %c0_i32 = arith.constant 0 : i32
    %c0_i32_0 = arith.constant 0 : i32
    %c0_i32_1 = arith.constant 0 : i32
    return %c0_i32, %c0_i32_0 : i32, i32
  }
  func.func @transform_3(%arg0: i32, %arg1: i32) -> (i32, i32, i32, i32, i32) {
    %c0_i32 = arith.constant 0 : i32
    %c0_i32_0 = arith.constant 0 : i32
    %c0_i32_1 = arith.constant 0 : i32
    %c0_i32_2 = arith.constant 0 : i32
    return %arg0, %arg1, %c0_i32, %c0_i32_0, %c0_i32_1 : i32, i32, i32, i32, i32
  }
}

</mosaic_0001>

<bundles_post_ra>
// kernel: conv_block_forward.3
= control target key start
LH: loop header
LB: loop body
LE: loop exit
PB: predicated region body
PF: predicated region fallthrough
CT: control target
= control target key end

     0   :  { %s556_s12 = smov 0   ;;  %s558_s13 = smov 0   ;;  %s731_s0 = inlined_call_operand.vmem [shape: f32[2,1,16,16,128], index: 0, kind: input, shape index: {}]   ;;  %s732_s1 = inlined_call_operand.vmem [shape: f32[1,128], index: 1, kind: input, shape index: {}]   ;;  %s733_s2 = inlined_call_operand.vmem [shape: f32[1,128], index: 2, kind: input, shape index: {}]   ;;  %s734_s3 = inlined_call_operand.vmem [shape: f32[2,1,16,16,128], index: 3, kind: output, shape index: {}]  }
   0x1   :  { %s560_s14 = smov 0  }
   0x2 LB: > { %s25_s15 = sadd.s32 1, %s530_s13  ;;  %p477_p0 = scmp.ge.s32.totalorder %s534_s14, 1  ;;  %s534_s14 = sphi %s560_s14, %s13_s14   ;;  %s530_s13 = sphi %s558_s13, %s736_s13   ;;  %s526_s12 = sphi %s556_s12, %s735_s12  }
   0x3   : > { %p27_p1 = scmp.ge.s32.totalorder %s25_s15, 2  ;;  %p157_p2 = scmp.lt.s32.totalorder %s534_s14, 3 }
   0x5   : > { %s738_s15 = smov (%p27_p1, %s25_s15), 0  ;;  %p158_p3 = pnand %p477_p0, %p157_p2 }
   0x6   : > { %p189_p4 = scmp.lt.s32.totalorder (!%p158_p3), %s526_s12, 1 }
   0x7   : > { %161 = sbr.rel (%p158_p3) target bundleno = 45 (0x2d), region = 32 }
   0xc   : > { %s740_s12 = smov (!%p189_p4, %s526_s12), 1  ;;  %v577_v0 = vld [vmem:[%s732_s1] ss:$0 sm:$0xff] }
   0xd   : > { %s486_s16 = sshll.u32 %s740_s12, 8  ;;  %v587_v1 = vld [vmem:[%s733_s2] ss:$0 sm:$0xff] }
   0xe   : > { %s582_s21 = scalar_lea.vmem %s731_s0, %s486_s16  ;;  %s610_s26 = scalar_lea.vmem %s734_s3, %s486_s16 }
   0xf   : > { %v209_v2 = vld [vmem:[%s582_s21] sm:$0xff]  ;;  %v210_v3 = vld [vmem:[%s582_s21 + $0x8] sm:$0xff]  ;;  %v211_v4 = vld [vmem:[%s582_s21 + $0x10] sm:$0xff] }
  0x10   : > { %v247_v5 = vmul.f32 %v577_v0, %v209_v2  ;;  %v248_v6 = vmul.f32 %v577_v0, %v210_v3  ;;  %v249_v7 = vmul.f32 %v577_v0, %v211_v4  ;;  %v212_v8 = vld [vmem:[%s582_s21 + $0x18] sm:$0xff]  ;;  %v213_v9 = vld [vmem:[%s582_s21 + $0x20] sm:$0xff]  ;;  %v214_v10 = vld [vmem:[%s582_s21 + $0x28] sm:$0xff] }
  0x11   : > { %v250_v11 = vmul.f32 %v577_v0, %v212_v8  ;;  %v251_v12 = vmul.f32 %v577_v0, %v213_v9  ;;  %v252_v13 = vmul.f32 %v577_v0, %v214_v10  ;;  %v215_v14 = vld [vmem:[%s582_s21 + $0x30] sm:$0xff]  ;;  %v216_v15 = vld [vmem:[%s582_s21 + $0x38] sm:$0xff]  ;;  %v217_v24 = vld [vmem:[%s582_s21 + $0x40] sm:$0xff] }
  0x12   : > { %v285_v16 = vadd.f32 %v587_v1, %v247_v5  ;;  %v286_v17 = vadd.f32 %v587_v1, %v248_v6  ;;  %v287_v18 = vadd.f32 %v587_v1, %v249_v7  ;;  %v253_v19 = vmul.f32 %v577_v0, %v215_v14  ;;  %v218_v25 = vld [vmem:[%s582_s21 + $0x48] sm:$0xff]  ;;  %v219_v26 = vld [vmem:[%s582_s21 + $0x50] sm:$0xff]  ;;  %v220_v31 = vld [vmem:[%s582_s21 + $0x58] sm:$0xff] }
  0x13   : > { %v288_v20 = vadd.f32 %v587_v1, %v250_v11  ;;  %v289_v21 = vadd.f32 %v587_v1, %v251_v12  ;;  %v290_v22 = vadd.f32 %v587_v1, %v252_v13  ;;  %v254_v23 = vmul.f32 %v577_v0, %v216_v15  ;;  %v221_v32 = vld [vmem:[%s582_s21 + $0x60] sm:$0xff]  ;;  %v222_v33 = vld [vmem:[%s582_s21 + $0x68] sm:$0xff]  ;;  %v223_v38 = vld [vmem:[%s582_s21 + $0x70] sm:$0xff] }
  0x14   : > { %v317_v27 = vmax.f32 %v285_v16, 0.0  ;;  %v318_v28 = vmax.f32 %v286_v17, 0.0  ;;  %v319_v29 = vmax.f32 %v287_v18, 0.0  ;;  %v291_v30 = vadd.f32 %v587_v1, %v253_v19  ;;  %v224_v43 = vld [vmem:[%s582_s21 + $0x78] sm:$0xff]  ;;  %v225_v56 = vld [vmem:[%s582_s21 + $0x80] sm:$0xff]  ;;  %v226_v57 = vld [vmem:[%s582_s21 + $0x88] sm:$0xff] }
  0x15   : > { %v320_v34 = vmax.f32 %v288_v20, 0.0  ;;  %v321_v35 = vmax.f32 %v289_v21, 0.0  ;;  %v322_v36 = vmax.f32 %v290_v22, 0.0  ;;  %v292_v37 = vadd.f32 %v587_v1, %v254_v23  ;;  %v227_v58 = vld [vmem:[%s582_s21 + $0x90] sm:$0xff]  ;;  %v228_v63 = vld [vmem:[%s582_s21 + $0x98] sm:$0xff]  ;;  %v229_v2 = vld [vmem:[%s582_s21 + $0xa0] sm:$0xff] }
  0x16   : > { %349 = vst [vmem:[%s610_s26] sm:$0xff] %v317_v27  ;;  %350 = vst [vmem:[%s610_s26 + $0x8] sm:$0xff] %v318_v28  ;;  %v323_v39 = vmax.f32 %v291_v30, 0.0  ;;  %v255_v40 = vmul.f32 %v577_v0, %v217_v24  ;;  %v256_v41 = vmul.f32 %v577_v0, %v218_v25  ;;  %v257_v42 = vmul.f32 %v577_v0, %v219_v26  ;;  %v230_v3 = vld [vmem:[%s582_s21 + $0xa8] sm:$0xff]  ;;  %v231_v8 = vld [vmem:[%s582_s21 + $0xb0] sm:$0xff] }
  0x17   : > { %351 = vst [vmem:[%s610_s26 + $0x10] sm:$0xff] %v319_v29  ;;  %352 = vst [vmem:[%s610_s26 + $0x18] sm:$0xff] %v320_v34  ;;  %v324_v44 = vmax.f32 %v292_v37, 0.0  ;;  %v258_v45 = vmul.f32 %v577_v0, %v220_v31  ;;  %v259_v46 = vmul.f32 %v577_v0, %v221_v32  ;;  %v260_v47 = vmul.f32 %v577_v0, %v222_v33  ;;  %v232_v13 = vld [vmem:[%s582_s21 + $0xb8] sm:$0xff]  ;;  %v233_v26 = vld [vmem:[%s582_s21 + $0xc0] sm:$0xff] }
  0x18   : > { %353 = vst [vmem:[%s610_s26 + $0x20] sm:$0xff] %v321_v35  ;;  %354 = vst [vmem:[%s610_s26 + $0x28] sm:$0xff] %v322_v36  ;;  %v293_v48 = vadd.f32 %v587_v1, %v255_v40  ;;  %v294_v49 = vadd.f32 %v587_v1, %v256_v41  ;;  %v295_v50 = vadd.f32 %v587_v1, %v257_v42  ;;  %v234_v27 = vld [vmem:[%s582_s21 + $0xc8] sm:$0xff]  ;;  %v235_v28 = vld [vmem:[%s582_s21 + $0xd0] sm:$0xff] }
  0x19   : > { %355 = vst [vmem:[%s610_s26 + $0x30] sm:$0xff] %v323_v39  ;;  %v261_v51 = vmul.f32 %v577_v0, %v223_v38  ;;  %356 = vst [vmem:[%s610_s26 + $0x38] sm:$0xff] %v324_v44  ;;  %v296_v52 = vadd.f32 %v587_v1, %v258_v45  ;;  %v297_v53 = vadd.f32 %v587_v1, %v259_v46  ;;  %v236_v33 = vld [vmem:[%s582_s21 + $0xd8] sm:$0xff]  ;;  %v237_v34 = vld [vmem:[%s582_s21 + $0xe0] sm:$0xff] }
  0x1a   : > { %v298_v54 = vadd.f32 %v587_v1, %v260_v47  ;;  %v262_v55 = vmul.f32 %v577_v0, %v224_v43  ;;  %v325_v59 = vmax.f32 %v293_v48, 0.0  ;;  %v326_v60 = vmax.f32 %v294_v49, 0.0  ;;  %v238_v35 = vld [vmem:[%s582_s21 + $0xe8] sm:$0xff]  ;;  %v239_v40 = vld [vmem:[%s582_s21 + $0xf0] sm:$0xff]  ;;  %v240_v45 = vld [vmem:[%s582_s21 + $0xf8] sm:$0xff] }
  0x1b   : > { %v327_v61 = vmax.f32 %v295_v50, 0.0  ;;  %v299_v62 = vadd.f32 %v587_v1, %v261_v51  ;;  %v328_v4 = vmax.f32 %v296_v52, 0.0  ;;  %v329_v5 = vmax.f32 %v297_v53, 0.0 }
  0x1c   : > { %v330_v6 = vmax.f32 %v298_v54, 0.0  ;;  %v300_v7 = vadd.f32 %v587_v1, %v262_v55  ;;  %357 = vst [vmem:[%s610_s26 + $0x40] sm:$0xff] %v325_v59  ;;  %358 = vst [vmem:[%s610_s26 + $0x48] sm:$0xff] %v326_v60  ;;  %v263_v10 = vmul.f32 %v577_v0, %v225_v56  ;;  %v264_v11 = vmul.f32 %v577_v0, %v226_v57 }
  0x1d   : > { %359 = vst [vmem:[%s610_s26 + $0x50] sm:$0xff] %v327_v61  ;;  %v331_v9 = vmax.f32 %v299_v62, 0.0  ;;  %v265_v12 = vmul.f32 %v577_v0, %v227_v58  ;;  %360 = vst [vmem:[%s610_s26 + $0x58] sm:$0xff] %v328_v4  ;;  %v266_v15 = vmul.f32 %v577_v0, %v228_v63  ;;  %v267_v16 = vmul.f32 %v577_v0, %v229_v2 }
  0x1e   : > { %361 = vst [vmem:[%s610_s26 + $0x60] sm:$0xff] %v329_v5  ;;  %362 = vst [vmem:[%s610_s26 + $0x68] sm:$0xff] %v330_v6  ;;  %v332_v14 = vmax.f32 %v300_v7, 0.0  ;;  %v268_v17 = vmul.f32 %v577_v0, %v230_v3  ;;  %v301_v18 = vadd.f32 %v587_v1, %v263_v10  ;;  %v302_v19 = vadd.f32 %v587_v1, %v264_v11 }
  0x1f   : > { %363 = vst [vmem:[%s610_s26 + $0x70] sm:$0xff] %v331_v9  ;;  %v303_v20 = vadd.f32 %v587_v1, %v265_v12  ;;  %v269_v21 = vmul.f32 %v577_v0, %v231_v8  ;;  %v304_v22 = vadd.f32 %v587_v1, %v266_v15  ;;  %v305_v23 = vadd.f32 %v587_v1, %v267_v16 }
  0x20   : > { %364 = vst [vmem:[%s610_s26 + $0x78] sm:$0xff] %v332_v14  ;;  %v306_v24 = vadd.f32 %v587_v1, %v268_v17  ;;  %v270_v25 = vmul.f32 %v577_v0, %v232_v13  ;;  %v333_v29 = vmax.f32 %v301_v18, 0.0  ;;  %v334_v30 = vmax.f32 %v302_v19, 0.0 }
  0x21   : > { %v335_v31 = vmax.f32 %v303_v20, 0.0  ;;  %v307_v32 = vadd.f32 %v587_v1, %v269_v21  ;;  %v336_v36 = vmax.f32 %v304_v22, 0.0  ;;  %v337_v37 = vmax.f32 %v305_v23, 0.0 }
  0x22   : > { %v338_v38 = vmax.f32 %v306_v24, 0.0  ;;  %v308_v39 = vadd.f32 %v587_v1, %v270_v25  ;;  %365 = vst [vmem:[%s610_s26 + $0x80] sm:$0xff] %v333_v29  ;;  %366 = vst [vmem:[%s610_s26 + $0x88] sm:$0xff] %v334_v30  ;;  %v271_v42 = vmul.f32 %v577_v0, %v233_v26  ;;  %v272_v43 = vmul.f32 %v577_v0, %v234_v27 }
  0x23   : > { %367 = vst [vmem:[%s610_s26 + $0x90] sm:$0xff] %v335_v31  ;;  %v339_v41 = vmax.f32 %v307_v32, 0.0  ;;  %v273_v44 = vmul.f32 %v577_v0, %v235_v28  ;;  %368 = vst [vmem:[%s610_s26 + $0x98] sm:$0xff] %v336_v36  ;;  %v274_v47 = vmul.f32 %v577_v0, %v236_v33  ;;  %v275_v48 = vmul.f32 %v577_v0, %v237_v34 }
  0x24   : > { %369 = vst [vmem:[%s610_s26 + $0xa0] sm:$0xff] %v337_v37  ;;  %370 = vst [vmem:[%s610_s26 + $0xa8] sm:$0xff] %v338_v38  ;;  %v340_v46 = vmax.f32 %v308_v39, 0.0  ;;  %v276_v49 = vmul.f32 %v577_v0, %v238_v35  ;;  %v309_v50 = vadd.f32 %v587_v1, %v271_v42  ;;  %v310_v51 = vadd.f32 %v587_v1, %v272_v43 }
  0x25   : > { %371 = vst [vmem:[%s610_s26 + $0xb0] sm:$0xff] %v339_v41  ;;  %v311_v52 = vadd.f32 %v587_v1, %v273_v44  ;;  %v277_v53 = vmul.f32 %v577_v0, %v239_v40  ;;  %v312_v54 = vadd.f32 %v587_v1, %v274_v47  ;;  %v313_v55 = vadd.f32 %v587_v1, %v275_v48 }
  0x26   : > { %372 = vst [vmem:[%s610_s26 + $0xb8] sm:$0xff] %v340_v46  ;;  %v314_v56 = vadd.f32 %v587_v1, %v276_v49  ;;  %v278_v57 = vmul.f32 %v577_v0, %v240_v45  ;;  %v341_v58 = vmax.f32 %v309_v50, 0.0  ;;  %v342_v59 = vmax.f32 %v310_v51, 0.0 }
  0x27   : > { %v343_v60 = vmax.f32 %v311_v52, 0.0  ;;  %v315_v61 = vadd.f32 %v587_v1, %v277_v53  ;;  %v344_v62 = vmax.f32 %v312_v54, 0.0  ;;  %v345_v63 = vmax.f32 %v313_v55, 0.0 }
  0x28   : > { %v346_v2 = vmax.f32 %v314_v56, 0.0  ;;  %v316_v3 = vadd.f32 %v587_v1, %v278_v57  ;;  %373 = vst [vmem:[%s610_s26 + $0xc0] sm:$0xff] %v341_v58  ;;  %374 = vst [vmem:[%s610_s26 + $0xc8] sm:$0xff] %v342_v59 }
  0x29   : > { %375 = vst [vmem:[%s610_s26 + $0xd0] sm:$0xff] %v343_v60  ;;  %v347_v4 = vmax.f32 %v315_v61, 0.0  ;;  %376 = vst [vmem:[%s610_s26 + $0xd8] sm:$0xff] %v344_v62 }
  0x2a   : > { %377 = vst [vmem:[%s610_s26 + $0xe0] sm:$0xff] %v345_v63  ;;  %378 = vst [vmem:[%s610_s26 + $0xe8] sm:$0xff] %v346_v2  ;;  %v348_v0 = vmax.f32 %v316_v3, 0.0 }
  0x2b   : > { %379 = vst [vmem:[%s610_s26 + $0xf0] sm:$0xff] %v347_v4 }
  0x2c   : > { %380 = vst [vmem:[%s610_s26 + $0xf8] sm:$0xff] %v348_v0 }
  0x2d PF: > { %s13_s14 = sadd.s32 1, %s534_s14   ;;  %s735_s12 = smov %s530_s13 }
  0x2e   : > { %p10_p5 = scmp.ge.s32.totalorder %s13_s14, 4   ;;  %s736_s13 = smov %s738_s15 }
  0x30   :  { %12 = sbr.rel (!%p10_p5) target bundleno = 2 (0x2), region = 62 }

// kernel: conv_block_forward.2
= control target key start
LH: loop header
LB: loop body
LE: loop exit
PB: predicated region body
PF: predicated region fallthrough
CT: control target
= control target key end

     0   :  { %s3109_s15 = smov 0   ;;  %s3111_s16 = smov 0   ;;  %s4659_s0 = inlined_call_operand.vmem [shape: f32[2,1,18,18,128], index: 0, kind: input, shape index: {}]   ;;  %s4660_s1 = inlined_call_operand.vmem [shape: f32[1152,128], index: 1, kind: input, shape index: {}]   ;;  %s4661_s2 = inlined_call_operand.vmem [shape: f32[1,128], index: 2, kind: input, shape index: {}]   ;;  %s4662_s3 = inlined_call_operand.vmem [shape: f32[2,1,16,16,128], index: 3, kind: output, shape index: {0}]   ;;  %s4663_s4 = inlined_call_operand.vmem [shape: f32[2,1,2,128], index: 4, kind: output, shape index: {1}]  }
   0x1   :  { %s3113_s17 = smov 0  }
   0x2 LB: > { %s27_s18 = sadd.s32 1, %s3077_s16  ;;  %p2672_p0 = scmp.ge.s32.totalorder %s3081_s17, 1  ;;  %s3081_s17 = sphi %s3113_s17, %s15_s17   ;;  %s3077_s16 = sphi %s3111_s16, %s4784_s16   ;;  %s3073_s15 = sphi %s3109_s15, %s4783_s15  }
   0x3   : > { %p29_p1 = scmp.ge.s32.totalorder %s27_s18, 2  ;;  %p187_p2 = scmp.lt.s32.totalorder %s3081_s17, 3 }
   0x5   : > { %s4786_s18 = smov (%p29_p1, %s27_s18), 0  ;;  %p188_p3 = pnand %p2672_p0, %p187_p2 }
   0x7   : > { %191 = sbr.rel (%p188_p3) target bundleno = 610 (0x262), region = 32 }
   0xc   : > { %v1134_v0 = vld [vmem:[%s4660_s1 + $0x78] sm:$0xff]  ;;  %v4692_v2 = vmov 0.0   ;;  %v1133_v3 = vld [vmem:[%s4660_s1 + $0x70] sm:$0xff]  ;;  %v1132_v5 = vld [vmem:[%s4660_s1 + $0x68] sm:$0xff]  ;;  %p228_p4 = scmp.lt.s32.totalorder %s3073_s15, 1 }
   0xd   : > { %v1166_v1 = vld [vmem:[%s4660_s1 + $0x178] sm:$0xff]  ;;  %1270 = vmatprep.subr.mxu0 %v4692_v2  ;;  %1495 = vmatprep.subr.mxu1 %v4692_v2  ;;  %v1165_v4 = vld [vmem:[%s4660_s1 + $0x170] sm:$0xff]  ;;  %v1164_v6 = vld [vmem:[%s4660_s1 + $0x168] sm:$0xff] }
   0xe   : > { %1271 = vmatpush1.msra.mxu0 %v1134_v0  ;;  %1496 = vmatpush1.msra.mxu1 %v1166_v1  ;;  %v1131_v7 = vld [vmem:[%s4660_s1 + $0x60] sm:$0xff]  ;;  %v1130_v9 = vld [vmem:[%s4660_s1 + $0x58] sm:$0xff]  ;;  %v1129_v11 = vld [vmem:[%s4660_s1 + $0x50] sm:$0xff]  ;;  %s4788_s15 = smov (!%p228_p4, %s3073_s15), 1 }
   0xf   : > { %1272 = vmatprep.subr.mxu0 %v4692_v2  ;;  %1497 = vmatprep.subr.mxu1 %v4692_v2  ;;  %v1163_v8 = vld [vmem:[%s4660_s1 + $0x160] sm:$0xff]  ;;  %v1162_v10 = vld [vmem:[%s4660_s1 + $0x158] sm:$0xff]  ;;  %v1161_v12 = vld [vmem:[%s4660_s1 + $0x150] sm:$0xff]  ;;  %s3033_s21 = smul.u32 432, %s4788_s15  ;;  %s2676_s12 = sshll.u32 %s4788_s15, 1 }
  0x10   : > { %1273 = vmatpush1.msra.mxu0 %v1133_v3  ;;  %1498 = vmatpush1.msra.mxu1 %v1165_v4  ;;  %v1128_v13 = vld [vmem:[%s4660_s1 + $0x48] sm:$0xff]  ;;  %v1127_v15 = vld [vmem:[%s4660_s1 + $0x40] sm:$0xff]  ;;  %v1126_v17 = vld [vmem:[%s4660_s1 + $0x38] sm:$0xff]  ;;  %s252_s19 = scalar_lea.vmem %s4663_s4, %s2676_s12 }
  0x11   : > { %1274 = vmatprep.subr.mxu0 %v4692_v2  ;;  %1499 = vmatprep.subr.mxu1 %v4692_v2  ;;  %v1160_v14 = vld [vmem:[%s4660_s1 + $0x148] sm:$0xff]  ;;  %v1159_v16 = vld [vmem:[%s4660_s1 + $0x140] sm:$0xff]  ;;  %v1158_v18 = vld [vmem:[%s4660_s1 + $0x138] sm:$0xff]  ;;  %s3375_s6 = scalar_lea.vmem %s4659_s0, %s3033_s21 }
  0x12   : > { %1275 = vmatpush1.msra.mxu0 %v1132_v5  ;;  %1500 = vmatpush1.msra.mxu1 %v1164_v6  ;;  %v1125_v19 = vld [vmem:[%s4660_s1 + $0x30] sm:$0xff]  ;;  %v1124_v21 = vld [vmem:[%s4660_s1 + $0x28] sm:$0xff]  ;;  %v1123_v23 = vld [vmem:[%s4660_s1 + $0x20] sm:$0xff] }
  0x13   : > { %1276 = vmatprep.subr.mxu0 %v4692_v2  ;;  %1501 = vmatprep.subr.mxu1 %v4692_v2  ;;  %v1157_v20 = vld [vmem:[%s4660_s1 + $0x130] sm:$0xff]  ;;  %v1156_v22 = vld [vmem:[%s4660_s1 + $0x128] sm:$0xff]  ;;  %v1155_v24 = vld [vmem:[%s4660_s1 + $0x120] sm:$0xff] }
  0x14   : > { %1277 = vmatpush1.msra.mxu0 %v1131_v7  ;;  %1502 = vmatpush1.msra.mxu1 %v1163_v8  ;;  %v1122_v25 = vld [vmem:[%s4660_s1 + $0x18] sm:$0xff]  ;;  %v1121_v27 = vld [vmem:[%s4660_s1 + $0x10] sm:$0xff]  ;;  %v1120_v29 = vld [vmem:[%s4660_s1 + $0x8] sm:$0xff] }
  0x15   : > { %1278 = vmatprep.subr.mxu0 %v4692_v2  ;;  %1503 = vmatprep.subr.mxu1 %v4692_v2  ;;  %v1154_v26 = vld [vmem:[%s4660_s1 + $0x118] sm:$0xff]  ;;  %v1153_v28 = vld [vmem:[%s4660_s1 + $0x110] sm:$0xff]  ;;  %v1152_v30 = vld [vmem:[%s4660_s1 + $0x108] sm:$0xff] }
  0x16   : > { %1279 = vmatpush1.msra.mxu0 %v1130_v9  ;;  %1504 = vmatpush1.msra.mxu1 %v1162_v10  ;;  %v1119_v31 = vld [vmem:[%s4660_s1] sm:$0xff]  ;;  %v1150_v33 = vld [vmem:[%s4660_s1 + $0xf8] sm:$0xff]  ;;  %v1149_v35 = vld [vmem:[%s4660_s1 + $0xf0] sm:$0xff] }
  0x17   : > { %1280 = vmatprep.subr.mxu0 %v4692_v2  ;;  %1505 = vmatprep.subr.mxu1 %v4692_v2  ;;  %v1151_v32 = vld [vmem:[%s4660_s1 + $0x100] sm:$0xff]  ;;  %v1182_v34 = vld [vmem:[%s4660_s1 + $0x1f8] sm:$0xff]  ;;  %v1181_v36 = vld [vmem:[%s4660_s1 + $0x1f0] sm:$0xff] }
  0x18   : > { %1281 = vmatpush1.msra.mxu0 %v1129_v11  ;;  %1506 = vmatpush1.msra.mxu1 %v1161_v12  ;;  %v1148_v37 = vld [vmem:[%s4660_s1 + $0xe8] sm:$0xff]  ;;  %v1147_v39 = vld [vmem:[%s4660_s1 + $0xe0] sm:$0xff]  ;;  %v1146_v41 = vld [vmem:[%s4660_s1 + $0xd8] sm:$0xff] }
  0x19   : > { %1282 = vmatprep.subr.mxu0 %v4692_v2  ;;  %1507 = vmatprep.subr.mxu1 %v4692_v2  ;;  %v1180_v38 = vld [vmem:[%s4660_s1 + $0x1e8] sm:$0xff]  ;;  %v1179_v40 = vld [vmem:[%s4660_s1 + $0x1e0] sm:$0xff]  ;;  %v1178_v42 = vld [vmem:[%s4660_s1 + $0x1d8] sm:$0xff] }
  0x1a   : > { %1283 = vmatpush1.msra.mxu0 %v1128_v13  ;;  %1508 = vmatpush1.msra.mxu1 %v1160_v14  ;;  %v1145_v43 = vld [vmem:[%s4660_s1 + $0xd0] sm:$0xff]  ;;  %v1144_v45 = vld [vmem:[%s4660_s1 + $0xc8] sm:$0xff]  ;;  %v1143_v47 = vld [vmem:[%s4660_s1 + $0xc0] sm:$0xff] }
  0x1b   : > { %1284 = vmatprep.subr.mxu0 %v4692_v2  ;;  %1509 = vmatprep.subr.mxu1 %v4692_v2  ;;  %v1177_v44 = vld [vmem:[%s4660_s1 + $0x1d0] sm:$0xff]  ;;  %v1176_v46 = vld [vmem:[%s4660_s1 + $0x1c8] sm:$0xff]  ;;  %v1175_v48 = vld [vmem:[%s4660_s1 + $0x1c0] sm:$0xff] }
  0x1c   : > { %1285 = vmatpush1.msra.mxu0 %v1127_v15  ;;  %1510 = vmatpush1.msra.mxu1 %v1159_v16  ;;  %v1142_v49 = vld [vmem:[%s4660_s1 + $0xb8] sm:$0xff]  ;;  %v1141_v51 = vld [vmem:[%s4660_s1 + $0xb0] sm:$0xff]  ;;  %v1140_v53 = vld [vmem:[%s4660_s1 + $0xa8] sm:$0xff] }
  0x1d   : > { %1286 = vmatprep.subr.mxu0 %v4692_v2  ;;  %1511 = vmatprep.subr.mxu1 %v4692_v2  ;;  %v1174_v50 = vld [vmem:[%s4660_s1 + $0x1b8] sm:$0xff]  ;;  %v1173_v52 = vld [vmem:[%s4660_s1 + $0x1b0] sm:$0xff]  ;;  %v1172_v54 = vld [vmem:[%s4660_s1 + $0x1a8] sm:$0xff] }
  0x1e   : > { %1287 = vmatpush1.msra.mxu0 %v1126_v17  ;;  %1512 = vmatpush1.msra.mxu1 %v1158_v18  ;;  %v1139_v55 = vld [vmem:[%s4660_s1 + $0xa0] sm:$0xff]  ;;  %v1138_v57 = vld [vmem:[%s4660_s1 + $0x98] sm:$0xff]  ;;  %v1137_v59 = vld [vmem:[%s4660_s1 + $0x90] sm:$0xff] }
  0x1f   : > { %1288 = vmatprep.subr.mxu0 %v4692_v2  ;;  %1513 = vmatprep.subr.mxu1 %v4692_v2  ;;  %v1171_v56 = vld [vmem:[%s4660_s1 + $0x1a0] sm:$0xff]  ;;  %v1170_v58 = vld [vmem:[%s4660_s1 + $0x198] sm:$0xff]  ;;  %v1169_v60 = vld [vmem:[%s4660_s1 + $0x190] sm:$0xff] }
  0x20   : > { %1289 = vmatpush1.msra.mxu0 %v1125_v19  ;;  %1514 = vmatpush1.msra.mxu1 %v1157_v20  ;;  %v1136_v61 = vld [vmem:[%s4660_s1 + $0x88] sm:$0xff]  ;;  %v1135_v63 = vld [vmem:[%s4660_s1 + $0x80] sm:$0xff]  ;;  %v2677_v3 = vld [vmem:[%s3375_s6 + $0x18] sm:$0xff] }
  0x21   : > { %1290 = vmatprep.subr.mxu0 %v4692_v2  ;;  %1515 = vmatprep.subr.mxu1 %v4692_v2  ;;  %v1168_v62 = vld [vmem:[%s4660_s1 + $0x188] sm:$0xff]  ;;  %v1167_v1 = vld [vmem:[%s4660_s1 + $0x180] sm:$0xff]  ;;  %v1198_v7 = vld [vmem:[%s4660_s1 + $0x278] sm:$0xff] }
  0x22   : > { %1291 = vmatpush1.msra.mxu0 %v1124_v21  ;;  %1516 = vmatpush1.msra.mxu1 %v1156_v22  ;;  %v317_v0 = vld [vmem:[%s3375_s6 + $0x1] sm:$0xff]  ;;  %v318_v6 = vld [vmem:[%s3375_s6 + $0x9] sm:$0xff]  ;;  %v3411_v12 = vld [vmem:[%s3375_s6 + $0x19] sm:$0xff] }
  0x23   : > { %1292 = vmatprep.subr.mxu0 %v4692_v2  ;;  %1517 = vmatprep.subr.mxu1 %v4692_v2  ;;  %v253_v4 = vld [vmem:[%s3375_s6] sm:$0xff]  ;;  %v254_v9 = vld [vmem:[%s3375_s6 + $0x8] sm:$0xff]  ;;  %v1197_v11 = vld [vmem:[%s4660_s1 + $0x270] sm:$0xff] }
  0x24   : > { %1293 = vmatpush1.msra.mxu0 %v1123_v23  ;;  %1518 = vmatpush1.msra.mxu1 %v1155_v24  ;;  %v381_v5 = vld [vmem:[%s3375_s6 + $0x2] sm:$0xff]  ;;  %v382_v10 = vld [vmem:[%s3375_s6 + $0xa] sm:$0xff]  ;;  %v1230_v15 = vld [vmem:[%s4660_s1 + $0x378] sm:$0xff] }
  0x25   : > { %1294 = vmatprep.subr.mxu0 %v4692_v2  ;;  %1519 = vmatprep.subr.mxu1 %v4692_v2  ;;  %v2678_v8 = vld [vmem:[%s3375_s6 + $0x20] sm:$0xff]  ;;  %v3415_v13 = vld [vmem:[%s3375_s6 + $0x30] sm:$0xff]  ;;  %v1196_v14 = vld [vmem:[%s4660_s1 + $0x268] sm:$0xff] }
  0x26   : > { %1295 = vmatpush1.msra.mxu0 %v1122_v25  ;;  %1520 = vmatpush1.msra.mxu1 %v1154_v26  ;;  %v3426_v16 = vld [vmem:[%s3375_s6 + $0x1a] sm:$0xff]  ;;  %v1229_v20 = vld [vmem:[%s4660_s1 + $0x370] sm:$0xff]  ;;  %v3446_v21 = vld [vmem:[%s3375_s6 + $0x22] sm:$0xff] }
  0x27   : > { %1296 = vmatprep.subr.mxu0 %v4692_v2  ;;  %1521 = vmatprep.subr.mxu1 %v4692_v2  ;;  %v3431_v17 = vld [vmem:[%s3375_s6 + $0x21] sm:$0xff]  ;;  %v3434_v18 = vld [vmem:[%s3375_s6 + $0x38] sm:$0xff] }
  0x28   : > { %1297 = vmatpush1.msra.mxu0 %v1121_v27  ;;  %1522 = vmatpush1.msra.mxu1 %v1153_v28  ;;  %v1195_v19 = vld [vmem:[%s4660_s1 + $0x260] sm:$0xff]  ;;  %v3450_v22 = vld [vmem:[%s3375_s6 + $0x31] sm:$0xff]  ;;  %v3453_v23 = vld [vmem:[%s3375_s6 + $0x48] sm:$0xff] }
  0x29   : > { %1298 = vmatprep.subr.mxu0 %v4692_v2  ;;  %1523 = vmatprep.subr.mxu1 %v4692_v2  ;;  %v1194_v24 = vld [vmem:[%s4660_s1 + $0x258] sm:$0xff]  ;;  %v1228_v25 = vld [vmem:[%s4660_s1 + $0x368] sm:$0xff]  ;;  %v3473_v28 = vld [vmem:[%s3375_s6 + $0x50] sm:$0xff] }
  0x2a   : > { %1299 = vmatpush1.msra.mxu0 %v1120_v29  ;;  %1524 = vmatpush1.msra.mxu1 %v1152_v30  ;;  %v3466_v26 = vld [vmem:[%s3375_s6 + $0x32] sm:$0xff]  ;;  %v1227_v30 = vld [vmem:[%s4660_s1 + $0x360] sm:$0xff] }
  0x2b   : > { %1300 = vmatprep.subr.mxu0 %v4692_v2  ;;  %1525 = vmatprep.subr.mxu1 %v4692_v2  ;;  %v3470_v27 = vld [vmem:[%s3375_s6 + $0x39] sm:$0xff]  ;;  %v1193_v29 = vld [vmem:[%s4660_s1 + $0x250] sm:$0xff] }
  0x2c   : > { %1301 = vmatpush1.msra.mxu0 %v1119_v31  ;;  %1526 = vmatpush1.msra.mxu1 %v1151_v32  ;;  %v3487_v31 = vld [vmem:[%s3375_s6 + $0x3a] sm:$0xff]  ;;  %v3491_v32 = vld [vmem:[%s3375_s6 + $0x49] sm:$0xff] }
  0x2d   : > { %1302 = vmatprep.subr.mxu0 %v4692_v2  ;;  %1527 = vmatprep.subr.mxu1 %v4692_v2 }
  0x2e   : > { %1303 = vmatpush2.msra.mxu0 %v1150_v33  ;;  %1528 = vmatpush2.msra.mxu1 %v1182_v34  ;;  %v3494_v33 = vld [vmem:[%s3375_s6 + $0x60] sm:$0xff]  ;;  %v1192_v34 = vld [vmem:[%s4660_s1 + $0x248] sm:$0xff] }
  0x2f   : > { %1304 = vmatprep.subr.mxu0 %v4692_v2  ;;  %1529 = vmatprep.subr.mxu1 %v4692_v2 }
  0x30   : > { %1305 = vmatpush2.msra.mxu0 %v1149_v35  ;;  %1530 = vmatpush2.msra.mxu1 %v1181_v36  ;;  %v1226_v35 = vld [vmem:[%s4660_s1 + $0x358] sm:$0xff]  ;;  %v3508_v36 = vld [vmem:[%s3375_s6 + $0x4a] sm:$0xff] }
  0x31   : > { %1306 = vmatprep.subr.mxu0 %v4692_v2  ;;  %1531 = vmatprep.subr.mxu1 %v4692_v2 }
  0x32   : > { %1307 = vmatpush2.msra.mxu0 %v1148_v37  ;;  %1532 = vmatpush2.msra.mxu1 %v1180_v38  ;;  %v3512_v37 = vld [vmem:[%s3375_s6 + $0x51] sm:$0xff]  ;;  %v3515_v38 = vld [vmem:[%s3375_s6 + $0x68] sm:$0xff] }
  0x33   : > { %1308 = vmatprep.subr.mxu0 %v4692_v2  ;;  %1533 = vmatprep.subr.mxu1 %v4692_v2 }
  0x34   : > { %1309 = vmatpush2.msra.mxu0 %v1147_v39  ;;  %1534 = vmatpush2.msra.mxu1 %v1179_v40  ;;  %v1191_v39 = vld [vmem:[%s4660_s1 + $0x240] sm:$0xff]  ;;  %v1225_v40 = vld [vmem:[%s4660_s1 + $0x350] sm:$0xff] }
  0x35   : > { %1310 = vmatprep.subr.mxu0 %v4692_v2  ;;  %1535 = vmatprep.subr.mxu1 %v4692_v2 }
  0x36   : > { %1311 = vmatpush2.msra.mxu0 %v1146_v41  ;;  %1536 = vmatpush2.msra.mxu1 %v1178_v42  ;;  %v3529_v41 = vld [vmem:[%s3375_s6 + $0x52] sm:$0xff]  ;;  %v3533_v42 = vld [vmem:[%s3375_s6 + $0x61] sm:$0xff] }
  0x37   : > { %1312 = vmatprep.subr.mxu0 %v4692_v2  ;;  %1537 = vmatprep.subr.mxu1 %v4692_v2 }
  0x38   : > { %1313 = vmatpush2.msra.mxu0 %v1145_v43  ;;  %1538 = vmatpush2.msra.mxu1 %v1177_v44  ;;  %v3536_v43 = vld [vmem:[%s3375_s6 + $0x78] sm:$0xff] }
  0x39   : > { %1314 = vmatprep.subr.mxu0 %v4692_v2  ;;  %1539 = vmatprep.subr.mxu1 %v4692_v2  ;;  %v1190_v44 = vld [vmem:[%s4660_s1 + $0x238] sm:$0xff] }
  0x3a   : > { %1315 = vmatpush2.msra.mxu0 %v1144_v45  ;;  %1540 = vmatpush2.msra.mxu1 %v1176_v46  ;;  %v1224_v45 = vld [vmem:[%s4660_s1 + $0x348] sm:$0xff] }
  0x3b   : > { %1316 = vmatprep.subr.mxu0 %v4692_v2  ;;  %1541 = vmatprep.subr.mxu1 %v4692_v2  ;;  %v3550_v46 = vld [vmem:[%s3375_s6 + $0x62] sm:$0xff] }
  0x3c   : > { %1317 = vmatpush2.msra.mxu0 %v1143_v47  ;;  %1542 = vmatpush2.msra.mxu1 %v1175_v48  ;;  %v3554_v47 = vld [vmem:[%s3375_s6 + $0x69] sm:$0xff]  ;;  %v3557_v48 = vld [vmem:[%s3375_s6 + $0x80] sm:$0xff] }
  0x3d   : > { %1318 = vmatprep.subr.mxu0 %v4692_v2  ;;  %1543 = vmatprep.subr.mxu1 %v4692_v2 }
  0x3e   : > { %1319 = vmatpush2.msra.mxu0 %v1142_v49  ;;  %1544 = vmatpush2.msra.mxu1 %v1174_v50  ;;  %v1189_v49 = vld [vmem:[%s4660_s1 + $0x230] sm:$0xff]  ;;  %v1223_v50 = vld [vmem:[%s4660_s1 + $0x340] sm:$0xff] }
  0x3f   : > { %1320 = vmatprep.subr.mxu0 %v4692_v2  ;;  %1545 = vmatprep.subr.mxu1 %v4692_v2 }
  0x40   : > { %1321 = vmatpush2.msra.mxu0 %v1141_v51  ;;  %1546 = vmatpush2.msra.mxu1 %v1173_v52  ;;  %v3571_v51 = vld [vmem:[%s3375_s6 + $0x6a] sm:$0xff]  ;;  %v3575_v52 = vld [vmem:[%s3375_s6 + $0x79] sm:$0xff] }
  0x41   : > { %1322 = vmatprep.subr.mxu0 %v4692_v2  ;;  %1547 = vmatprep.subr.mxu1 %v4692_v2 }
  0x42   : > { %1323 = vmatpush2.msra.mxu0 %v1140_v53  ;;  %1548 = vmatpush2.msra.mxu1 %v1172_v54  ;;  %v3578_v53 = vld [vmem:[%s3375_s6 + $0x90] sm:$0xff]  ;;  %v1188_v54 = vld [vmem:[%s4660_s1 + $0x228] sm:$0xff] }
  0x43   : > { %1324 = vmatprep.subr.mxu0 %v4692_v2  ;;  %1549 = vmatprep.subr.mxu1 %v4692_v2 }
  0x44   : > { %1325 = vmatpush2.msra.mxu0 %v1139_v55  ;;  %1550 = vmatpush2.msra.mxu1 %v1171_v56  ;;  %v1222_v55 = vld [vmem:[%s4660_s1 + $0x338] sm:$0xff] }
  0x45   : > { %1326 = vmatprep.subr.mxu0 %v4692_v2  ;;  %1551 = vmatprep.subr.mxu1 %v4692_v2  ;;  %v3592_v56 = vld [vmem:[%s3375_s6 + $0x7a] sm:$0xff] }
  0x46   : > { %1327 = vmatpush2.msra.mxu0 %v1138_v57  ;;  %1552 = vmatpush2.msra.mxu1 %v1170_v58  ;;  %v3596_v57 = vld [vmem:[%s3375_s6 + $0x81] sm:$0xff]  ;;  %v3599_v58 = vld [vmem:[%s3375_s6 + $0x98] sm:$0xff] }
  0x47   : > { %1328 = vmatprep.subr.mxu0 %v4692_v2  ;;  %1553 = vmatprep.subr.mxu1 %v4692_v2 }
  0x48   : > { %1329 = vmatpush2.msra.mxu0 %v1137_v59  ;;  %1554 = vmatpush2.msra.mxu1 %v1169_v60  ;;  %v1187_v59 = vld [vmem:[%s4660_s1 + $0x220] sm:$0xff]  ;;  %v1221_v60 = vld [vmem:[%s4660_s1 + $0x330] sm:$0xff] }
  0x49   : > { %1330 = vmatprep.subr.mxu0 %v4692_v2  ;;  %1555 = vmatprep.subr.mxu1 %v4692_v2 }
  0x4a   : > { %1331 = vmatpush2.msra.mxu0 %v1136_v61  ;;  %1556 = vmatpush2.msra.mxu1 %v1168_v62  ;;  %v3613_v61 = vld [vmem:[%s3375_s6 + $0x82] sm:$0xff]  ;;  %v3617_v62 = vld [vmem:[%s3375_s6 + $0x91] sm:$0xff] }
  0x4b   : > { %1332 = vmatprep.subr.mxu0 %v4692_v2  ;;  %1557 = vmatprep.subr.mxu1 %v4692_v2 }
  0x4c   : > { %1333 = vmatpush2.msra.mxu0 %v1135_v63  ;;  %1334 = vmatprep.mubr.f32.mxu0 %v317_v0  ;;  %v3620_v63 = vld [vmem:[%s3375_s6 + $0xa8] sm:$0xff]  ;;  %v1186_v0 = vld [vmem:[%s4660_s1 + $0x218] sm:$0xff] }
  0x4d   : > { %1558 = vmatpush2.msra.mxu1 %v1167_v1  ;;  %1559 = vmatprep.mubr.f32.mxu1 %v2677_v3  ;;  %v1220_v1 = vld [vmem:[%s4660_s1 + $0x328] sm:$0xff] }
  0x4e   : > { %1335 = vmatmul.mubr.f32.vlgmr.msra.gmra.mxu0 %v253_v4  ;;  %1560 = vmatmul.mubr.f32.vlgmr.msra.gmra.mxu1 %v381_v5  ;;  %v3638_v4 = vld [vmem:[%s3375_s6 + $0x99] sm:$0xff]  ;;  %v3641_v5 = vld [vmem:[%s3375_s6 + $0xb0] sm:$0xff] }
  0x4f   : > { %1720 = vmatprep.subr.mxu0 %v4692_v2  ;;  %1339 = vmatprep.mubr.f32.mxu0 %v318_v6  ;;  %v1185_v6 = vld [vmem:[%s4660_s1 + $0x210] sm:$0xff] }
  0x50   : > { %1721 = vmatpush1.msra.mxu0 %v1198_v7  ;;  %1564 = vmatprep.mubr.f32.mxu1 %v2678_v8  ;;  %v1219_v7 = vld [vmem:[%s4660_s1 + $0x320] sm:$0xff] }
  0x51   : > { %1722 = vmatprep.subr.mxu0 %v4692_v2  ;;  %1945 = vmatprep.subr.mxu1 %v4692_v2 }
  0x52   : > { %1340 = vmatmul.mubr.f32.gmra.mxu0 %v254_v9  ;;  %1565 = vmatmul.mubr.f32.gmra.mxu1 %v382_v10  ;;  %v3659_v9 = vld [vmem:[%s3375_s6 + $0xa9] sm:$0xff]  ;;  %v3662_v10 = vld [vmem:[%s3375_s6 + $0xc0] sm:$0xff] }
  0x53   : > { %1723 = vmatpush1.msra.mxu0 %v1197_v11  ;;  %1344 = vmatprep.mubr.f32.mxu0 %v3411_v12  ;;  %v1184_v11 = vld [vmem:[%s4660_s1 + $0x208] sm:$0xff] }
  0x54   : > { %1569 = vmatprep.mubr.f32.mxu1 %v3415_v13  ;;  %1724 = vmatprep.subr.mxu0 %v4692_v2 }
  0x55   : > { %1725 = vmatpush1.msra.mxu0 %v1196_v14  ;;  %1946 = vmatpush1.msra.mxu1 %v1230_v15  ;;  %v1218_v14 = vld [vmem:[%s4660_s1 + $0x318] sm:$0xff]  ;;  %v3676_v15 = vld [vmem:[%s3375_s6 + $0xaa] sm:$0xff] }
  0x56   : > { %1345 = vmatmul.mubr.f32.gmra.mxu0 %v2677_v3  ;;  %1570 = vmatmul.mubr.f32.gmra.mxu1 %v3426_v16  ;;  %v3634_v3 = vld [vmem:[%s3375_s6 + $0x92] sm:$0xff] }
  0x57   : > { %1349 = vmatprep.mubr.f32.mxu0 %v3431_v17  ;;  %1574 = vmatprep.mubr.f32.mxu1 %v3434_v18 }
  0x58   : > { %1726 = vmatprep.subr.mxu0 %v4692_v2  ;;  %1947 = vmatprep.subr.mxu1 %v4692_v2 }
  0x59   : > { %1727 = vmatpush1.msra.mxu0 %v1195_v19  ;;  %1948 = vmatpush1.msra.mxu1 %v1229_v20  ;;  %v3680_v19 = vld [vmem:[%s3375_s6 + $0xb1] sm:$0xff]  ;;  %v3683_v20 = vld [vmem:[%s3375_s6 + $0xc8] sm:$0xff] }
  0x5a   : > { %1350 = vmatmul.mubr.f32.gmra.mxu0 %v2678_v8  ;;  %1575 = vmatmul.mubr.f32.gmra.mxu1 %v3446_v21  ;;  %v3655_v8 = vld [vmem:[%s3375_s6 + $0x9a] sm:$0xff] }
  0x5b   : > { %1354 = vmatprep.mubr.f32.mxu0 %v3450_v22  ;;  %1579 = vmatprep.mubr.f32.mxu1 %v3453_v23 }
  0x5c   : > { %1728 = vmatprep.subr.mxu0 %v4692_v2  ;;  %1949 = vmatprep.subr.mxu1 %v4692_v2 }
  0x5d   : > { %1729 = vmatpush1.msra.mxu0 %v1194_v24  ;;  %1950 = vmatpush1.msra.mxu1 %v1228_v25  ;;  %v1183_v24 = vld [vmem:[%s4660_s1 + $0x200] sm:$0xff]  ;;  %v1217_v25 = vld [vmem:[%s4660_s1 + $0x310] sm:$0xff] }
  0x5e   : > { %1355 = vmatmul.mubr.f32.gmra.mxu0 %v3415_v13  ;;  %1580 = vmatmul.mubr.f32.gmra.mxu1 %v3466_v26 }
  0x5f   : > { %1359 = vmatprep.mubr.f32.mxu0 %v3470_v27  ;;  %1584 = vmatprep.mubr.f32.mxu1 %v3473_v28 }
  0x60   : > { %1730 = vmatprep.subr.mxu0 %v4692_v2  ;;  %1951 = vmatprep.subr.mxu1 %v4692_v2 }
  0x61   : > { %1731 = vmatpush1.msra.mxu0 %v1193_v29  ;;  %1952 = vmatpush1.msra.mxu1 %v1227_v30  ;;  %v3697_v29 = vld [vmem:[%s3375_s6 + $0xb2] sm:$0xff]  ;;  %v3701_v30 = vld [vmem:[%s3375_s6 + $0xc1] sm:$0xff] }
  0x62   : > { %1360 = vmatmul.mubr.f32.gmra.mxu0 %v3434_v18  ;;  %1585 = vmatmul.mubr.f32.gmra.mxu1 %v3487_v31 }
  0x63   : > { %1364 = vmatprep.mubr.f32.mxu0 %v3491_v32  ;;  %1589 = vmatprep.mubr.f32.mxu1 %v3494_v33 }
  0x64   : > { %1732 = vmatprep.subr.mxu0 %v4692_v2  ;;  %1953 = vmatprep.subr.mxu1 %v4692_v2 }
  0x65   : > { %1733 = vmatpush1.msra.mxu0 %v1192_v34  ;;  %1954 = vmatpush1.msra.mxu1 %v1226_v35  ;;  %v3704_v34 = vld [vmem:[%s3375_s6 + $0xd8] sm:$0xff] }
  0x66   : > { %1365 = vmatmul.mubr.f32.gmra.mxu0 %v3453_v23  ;;  %1590 = vmatmul.mubr.f32.gmra.mxu1 %v3508_v36  ;;  %v1214_v35 = vld [vmem:[%s4660_s1 + $0x2f8] sm:$0xff] }
  0x67   : > { %1369 = vmatprep.mubr.f32.mxu0 %v3512_v37  ;;  %1594 = vmatprep.mubr.f32.mxu1 %v3515_v38 }
  0x68   : > { %1734 = vmatprep.subr.mxu0 %v4692_v2  ;;  %1955 = vmatprep.subr.mxu1 %v4692_v2 }
  0x69   : > { %1735 = vmatpush1.msra.mxu0 %v1191_v39  ;;  %1956 = vmatpush1.msra.mxu1 %v1225_v40  ;;  %v1216_v39 = vld [vmem:[%s4660_s1 + $0x308] sm:$0xff] }
  0x6a   : > { %1370 = vmatmul.mubr.f32.gmra.mxu0 %v3473_v28  ;;  %1595 = vmatmul.mubr.f32.gmra.mxu1 %v3529_v41  ;;  %v3718_v40 = vld [vmem:[%s3375_s6 + $0xc2] sm:$0xff] }
  0x6b   : > { %1374 = vmatprep.mubr.f32.mxu0 %v3533_v42  ;;  %1599 = vmatprep.mubr.f32.mxu1 %v3536_v43 }
  0x6c   : > { %1736 = vmatprep.subr.mxu0 %v4692_v2  ;;  %1957 = vmatprep.subr.mxu1 %v4692_v2 }
  0x6d   : > { %1737 = vmatpush1.msra.mxu0 %v1190_v44  ;;  %1958 = vmatpush1.msra.mxu1 %v1224_v45  ;;  %v3722_v44 = vld [vmem:[%s3375_s6 + $0xc9] sm:$0xff]  ;;  %v3725_v45 = vld [vmem:[%s3375_s6 + $0xe0] sm:$0xff] }
  0x6e   : > { %1375 = vmatmul.mubr.f32.gmra.mxu0 %v3494_v33  ;;  %1600 = vmatmul.mubr.f32.gmra.mxu1 %v3550_v46 }
  0x6f   : > { %1379 = vmatprep.mubr.f32.mxu0 %v3554_v47  ;;  %1604 = vmatprep.mubr.f32.mxu1 %v3557_v48 }
  0x70   : > { %1738 = vmatprep.subr.mxu0 %v4692_v2  ;;  %1959 = vmatprep.subr.mxu1 %v4692_v2 }
  0x71   : > { %1739 = vmatpush1.msra.mxu0 %v1189_v49  ;;  %1960 = vmatpush1.msra.mxu1 %v1223_v50  ;;  %v1213_v49 = vld [vmem:[%s4660_s1 + $0x2f0] sm:$0xff]  ;;  %v1215_v50 = vld [vmem:[%s4660_s1 + $0x300] sm:$0xff] }
  0x72   : > { %1380 = vmatmul.mubr.f32.gmra.mxu0 %v3515_v38  ;;  %1605 = vmatmul.mubr.f32.gmra.mxu1 %v3571_v51 }
  0x73   : > { %1384 = vmatprep.mubr.f32.mxu0 %v3575_v52  ;;  %1609 = vmatprep.mubr.f32.mxu1 %v3578_v53 }
  0x74   : > { %1740 = vmatprep.subr.mxu0 %v4692_v2  ;;  %1961 = vmatprep.subr.mxu1 %v4692_v2 }
  0x75   : > { %1741 = vmatpush1.msra.mxu0 %v1188_v54  ;;  %1962 = vmatpush1.msra.mxu1 %v1222_v55  ;;  %v3739_v54 = vld [vmem:[%s3375_s6 + $0xca] sm:$0xff]  ;;  %v3743_v55 = vld [vmem:[%s3375_s6 + $0xd9] sm:$0xff] }
  0x76   : > { %1385 = vmatmul.mubr.f32.gmra.mxu0 %v3536_v43  ;;  %1610 = vmatmul.mubr.f32.gmra.mxu1 %v3592_v56 }
  0x77   : > { %1389 = vmatprep.mubr.f32.mxu0 %v3596_v57  ;;  %1614 = vmatprep.mubr.f32.mxu1 %v3599_v58 }
  0x78   : > { %1742 = vmatprep.subr.mxu0 %v4692_v2  ;;  %1963 = vmatprep.subr.mxu1 %v4692_v2 }
  0x79   : > { %1743 = vmatpush1.msra.mxu0 %v1187_v59  ;;  %1964 = vmatpush1.msra.mxu1 %v1221_v60  ;;  %v3746_v59 = vld [vmem:[%s3375_s6 + $0xf0] sm:$0xff]  ;;  %v1212_v60 = vld [vmem:[%s4660_s1 + $0x2e8] sm:$0xff] }
  0x7a   : > { %1390 = vmatmul.mubr.f32.gmra.mxu0 %v3557_v48  ;;  %1615 = vmatmul.mubr.f32.gmra.mxu1 %v3613_v61  ;;  %4706 = vst [vmem:[#allocation3_spill] sm:$0xff] %v3746_v59 }
  0x7b   : > { %1394 = vmatprep.mubr.f32.mxu0 %v3617_v62  ;;  %1619 = vmatprep.mubr.f32.mxu1 %v3620_v63 }
  0x7c   : > { %1744 = vmatprep.subr.mxu0 %v4692_v2  ;;  %1965 = vmatprep.subr.mxu1 %v4692_v2 }
  0x7d   : > { %1745 = vmatpush1.msra.mxu0 %v1186_v0  ;;  %1966 = vmatpush1.msra.mxu1 %v1220_v1  ;;  %v1246_v0 = vld [vmem:[%s4660_s1 + $0x3f8] sm:$0xff] }
  0x7e   : > { %1395 = vmatmul.mubr.f32.gmra.mxu0 %v3578_v53  ;;  %1620 = vmatmul.mubr.f32.gmra.mxu1 %v3634_v3  ;;  %v3760_v1 = vld [vmem:[%s3375_s6 + $0xda] sm:$0xff] }
  0x7f   : > { %1399 = vmatprep.mubr.f32.mxu0 %v3638_v4  ;;  %1624 = vmatprep.mubr.f32.mxu1 %v3641_v5 }
  0x80   : > { %1746 = vmatprep.subr.mxu0 %v4692_v2  ;;  %1967 = vmatprep.subr.mxu1 %v4692_v2 }
  0x81   : > { %1747 = vmatpush1.msra.mxu0 %v1185_v6  ;;  %1968 = vmatpush1.msra.mxu1 %v1219_v7  ;;  %v3764_v6 = vld [vmem:[%s3375_s6 + $0xe1] sm:$0xff]  ;;  %v3767_v7 = vld [vmem:[%s3375_s6 + $0xf8] sm:$0xff] }
  0x82   : > { %1400 = vmatmul.mubr.f32.gmra.mxu0 %v3599_v58  ;;  %1625 = vmatmul.mubr.f32.gmra.mxu1 %v3655_v8  ;;  %4707 = vst [vmem:[#allocation4_spill] sm:$0xff] %v3767_v7 }
  0x83   : > { %1404 = vmatprep.mubr.f32.mxu0 %v3659_v9  ;;  %1629 = vmatprep.mubr.f32.mxu1 %v3662_v10 }
  0x84   : > { %1748 = vmatprep.subr.mxu0 %v4692_v2  ;;  %1969 = vmatprep.subr.mxu1 %v4692_v2 }
  0x85   : > { %1749 = vmatpush1.msra.mxu0 %v1184_v11  ;;  %1970 = vmatpush1.msra.mxu1 %v1218_v14  ;;  %v1211_v11 = vld [vmem:[%s4660_s1 + $0x2e0] sm:$0xff]  ;;  %v1245_v14 = vld [vmem:[%s4660_s1 + $0x3f0] sm:$0xff] }
  0x86   : > { %1405 = vmatmul.mubr.f32.gmra.mxu0 %v3620_v63  ;;  %1630 = vmatmul.mubr.f32.gmra.mxu1 %v3676_v15 }
  0x87   : > { %1409 = vmatprep.mubr.f32.mxu0 %v3680_v19  ;;  %1634 = vmatprep.mubr.f32.mxu1 %v3683_v20 }
  0x88   : > { %1750 = vmatprep.subr.mxu0 %v4692_v2  ;;  %1971 = vmatprep.subr.mxu1 %v4692_v2 }
  0x89   : > { %1751 = vmatpush1.msra.mxu0 %v1183_v24  ;;  %1972 = vmatpush1.msra.mxu1 %v1217_v25  ;;  %v3781_v24 = vld [vmem:[%s3375_s6 + $0xe2] sm:$0xff]  ;;  %v3785_v25 = vld [vmem:[%s3375_s6 + $0xf1] sm:$0xff] }
  0x8a   : > { %1410 = vmatmul.mubr.f32.gmra.mxu0 %v3641_v5  ;;  %1635 = vmatmul.mubr.f32.gmra.mxu1 %v3697_v29  ;;  %4708 = vst [vmem:[#allocation5_spill] sm:$0xff] %v3781_v24 }
  0x8b   : > { %1414 = vmatprep.mubr.f32.mxu0 %v3701_v30  ;;  %1639 = vmatprep.mubr.f32.mxu1 %v3704_v34 }
  0x8c   : > { %1752 = vmatprep.subr.mxu0 %v4692_v2  ;;  %1973 = vmatprep.subr.mxu1 %v4692_v2 }
  0x8d   : > { %1753 = vmatpush2.msra.mxu0 %v1214_v35  ;;  %1974 = vmatpush1.msra.mxu1 %v1216_v39  ;;  %v3788_v35 = vld [vmem:[%s3375_s6 + $0x108] sm:$0xff]  ;;  %v1210_v39 = vld [vmem:[%s4660_s1 + $0x2d8] sm:$0xff] }
  0x8e   : > { %1415 = vmatmul.mubr.f32.gmra.mxu0 %v3662_v10  ;;  %1640 = vmatmul.mubr.f32.gmra.mxu1 %v3718_v40  ;;  %4709 = vst [vmem:[#allocation6_spill] sm:$0xff] %v3788_v35 }
  0x8f   : > { %1419 = vmatprep.mubr.f32.mxu0 %v3722_v44  ;;  %1644 = vmatprep.mubr.f32.mxu1 %v3725_v45 }
  0x90   : > { %1754 = vmatprep.subr.mxu0 %v4692_v2  ;;  %1975 = vmatprep.subr.mxu1 %v4692_v2 }
  0x91   : > { %1755 = vmatpush2.msra.mxu0 %v1213_v49  ;;  %1976 = vmatpush1.msra.mxu1 %v1215_v50  ;;  %v1244_v49 = vld [vmem:[%s4660_s1 + $0x3e8] sm:$0xff]  ;;  %v3802_v50 = vld [vmem:[%s3375_s6 + $0xf2] sm:$0xff] }
  0x92   : > { %1420 = vmatmul.mubr.f32.gmra.mxu0 %v3683_v20  ;;  %1645 = vmatmul.mubr.f32.gmra.mxu1 %v3739_v54  ;;  %4710 = vst [vmem:[#allocation7_spill] sm:$0xff] %v3802_v50 }
  0x93   : > { %1424 = vmatprep.mubr.f32.mxu0 %v3743_v55  ;;  %1649 = vmatprep.mubr.f32.mxu1 %v3746_v59 }
  0x94   : > { %1756 = vmatprep.subr.mxu0 %v4692_v2  ;;  %1977 = vmatprep.subr.mxu1 %v4692_v2 }
  0x95   : > { %1757 = vmatpush2.msra.mxu0 %v1212_v60  ;;  %1978 = vmatpush2.msra.mxu1 %v1246_v0  ;;  %v3806_v60 = vld [vmem:[%s3375_s6 + $0xf9] sm:$0xff]  ;;  %v3809_v0 = vld [vmem:[%s3375_s6 + $0x110] sm:$0xff] }
  0x96   : > { %1425 = vmatmul.mubr.f32.gmra.mxu0 %v3704_v34  ;;  %1650 = vmatmul.mubr.f32.gmra.mxu1 %v3760_v1  ;;  %4711 = vst [vmem:[#allocation8_spill] sm:$0xff] %v3806_v60  ;;  %4712 = vst [vmem:[#allocation9_spill] sm:$0xff] %v3809_v0 }
  0x97   : > { %1429 = vmatprep.mubr.f32.mxu0 %v3764_v6  ;;  %1654 = vmatprep.mubr.f32.mxu1 %v3767_v7 }
  0x98   : > { %1758 = vmatprep.subr.mxu0 %v4692_v2  ;;  %1979 = vmatprep.subr.mxu1 %v4692_v2 }
  0x99   : > { %1759 = vmatpush2.msra.mxu0 %v1211_v11  ;;  %1980 = vmatpush2.msra.mxu1 %v1245_v14  ;;  %v1209_v11 = vld [vmem:[%s4660_s1 + $0x2d0] sm:$0xff]  ;;  %v1243_v14 = vld [vmem:[%s4660_s1 + $0x3e0] sm:$0xff] }
  0x9a   : > { %1430 = vmatmul.mubr.f32.gmra.mxu0 %v3725_v45  ;;  %1655 = vmatmul.mubr.f32.gmra.mxu1 %v3781_v24  ;;  %v1242_v24 = vld [vmem:[%s4660_s1 + $0x3d8] sm:$0xff] }
  0x9b   : > { %1434 = vmatprep.mubr.f32.mxu0 %v3785_v25  ;;  %1659 = vmatprep.mubr.f32.mxu1 %v3788_v35 }
  0x9c   : > { %1760 = vmatprep.subr.mxu0 %v4692_v2  ;;  %1981 = vmatprep.subr.mxu1 %v4692_v2 }
  0x9d   : > { %1761 = vmatpush2.msra.mxu0 %v1210_v39  ;;  %1982 = vmatpush2.msra.mxu1 %v1244_v49  ;;  %v3823_v39 = vld [vmem:[%s3375_s6 + $0xfa] sm:$0xff]  ;;  %v3827_v49 = vld [vmem:[%s3375_s6 + $0x109] sm:$0xff] }
  0x9e   : > { %1435 = vmatmul.mubr.f32.gmra.mxu0 %v3746_v59  ;;  %1660 = vmatmul.mubr.f32.gmra.mxu1 %v3802_v50  ;;  %4713 = vst [vmem:[#allocation10_spill] sm:$0xff] %v3823_v39  ;;  %4714 = vst [vmem:[#allocation11_spill] sm:$0xff] %v3827_v49  ;;  %v3830_v50 = vld [vmem:[%s3375_s6 + $0x120] sm:$0xff] }
  0x9f   : > { %1439 = vmatprep.mubr.f32.mxu0 %v3806_v60  ;;  %1664 = vmatprep.mubr.f32.mxu1 %v3809_v0  ;;  %4715 = vst [vmem:[#allocation12_spill] sm:$0xff] %v3830_v50  ;;  %v1208_v60 = vld [vmem:[%s4660_s1 + $0x2c8] sm:$0xff]  ;;  %v3991_v59 = vld [vmem:[%s3375_s6 + $0x15a] sm:$0xff] }
  0xa0   : > { %1762 = vmatprep.subr.mxu0 %v4692_v2  ;;  %1983 = vmatprep.subr.mxu1 %v4692_v2  ;;  %4735 = vst [vmem:[#allocation31_spill] sm:$0xff] %v3991_v59 }
  0xa1   : > { %1763 = vmatpush2.msra.mxu0 %v1209_v11  ;;  %1984 = vmatpush2.msra.mxu1 %v1243_v14  ;;  %v3844_v11 = vld [vmem:[%s3375_s6 + $0x10a] sm:$0xff] }
  0xa2   : > { %1440 = vmatmul.mubr.f32.gmra.mxu0 %v3767_v7  ;;  %1665 = vmatmul.mubr.f32.gmra.mxu1 %v3823_v39  ;;  %4716 = vst [vmem:[#allocation13_spill] sm:$0xff] %v3844_v11  ;;  %v3848_v14 = vld [vmem:[%s3375_s6 + $0x111] sm:$0xff]  ;;  %v3851_v39 = vld [vmem:[%s3375_s6 + $0x128] sm:$0xff] }
  0xa3   : > { %1444 = vmatprep.mubr.f32.mxu0 %v3827_v49  ;;  %1669 = vmatprep.mubr.f32.mxu1 %v3830_v50  ;;  %4717 = vst [vmem:[#allocation14_spill] sm:$0xff] %v3848_v14  ;;  %4718 = vst [vmem:[#allocation15_spill] sm:$0xff] %v3851_v39  ;;  %v1207_v49 = vld [vmem:[%s4660_s1 + $0x2c0] sm:$0xff]  ;;  %v1241_v7 = vld [vmem:[%s4660_s1 + $0x3d0] sm:$0xff] }
  0xa4   : > { %1764 = vmatprep.subr.mxu0 %v4692_v2  ;;  %1985 = vmatprep.subr.mxu1 %v4692_v2 }
  0xa5   : > { %1765 = vmatpush2.msra.mxu0 %v1208_v60  ;;  %1986 = vmatpush2.msra.mxu1 %v1242_v24  ;;  %v3865_v60 = vld [vmem:[%s3375_s6 + $0x112] sm:$0xff]  ;;  %v3869_v24 = vld [vmem:[%s3375_s6 + $0x121] sm:$0xff] }
  0xa6   : > { %1445 = vmatmul.mubr.f32.gmra.mxu0 %v3788_v35  ;;  %1670 = vmatmul.mubr.f32.gmra.mxu1 %v3844_v11  ;;  %4719 = vst [vmem:[#allocation16_spill] sm:$0xff] %v3865_v60  ;;  %4720 = vst [vmem:[#allocation17_spill] sm:$0xff] %v3869_v24  ;;  %v3872_v11 = vld [vmem:[%s3375_s6 + $0x138] sm:$0xff]  ;;  %v1240_v35 = vld [vmem:[%s4660_s1 + $0x3c8] sm:$0xff] }
  0xa7   : > { %1449 = vmatprep.mubr.f32.mxu0 %v3848_v14  ;;  %1674 = vmatprep.mubr.f32.mxu1 %v3851_v39  ;;  %4721 = vst [vmem:[#allocation18_spill] sm:$0xff] %v3872_v11  ;;  %v1206_v14 = vld [vmem:[%s4660_s1 + $0x2b8] sm:$0xff] }
  0xa8   : > { %1766 = vmatprep.subr.mxu0 %v4692_v2  ;;  %1987 = vmatprep.subr.mxu1 %v4692_v2 }
  0xa9   : > { %1767 = vmatpush2.msra.mxu0 %v1207_v49  ;;  %1988 = vmatpush2.msra.mxu1 %v1241_v7  ;;  %v3886_v49 = vld [vmem:[%s3375_s6 + $0x122] sm:$0xff] }
  0xaa   : > { %1450 = vmatmul.mubr.f32.gmra.mxu0 %v3809_v0  ;;  %1675 = vmatmul.mubr.f32.gmra.mxu1 %v3865_v60  ;;  %4722 = vst [vmem:[#allocation19_spill] sm:$0xff] %v3886_v49  ;;  %v3890_v7 = vld [vmem:[%s3375_s6 + $0x129] sm:$0xff]  ;;  %v3893_v60 = vld [vmem:[%s3375_s6 + $0x140] sm:$0xff] }
  0xab   : > { %1454 = vmatprep.mubr.f32.mxu0 %v3869_v24  ;;  %1679 = vmatprep.mubr.f32.mxu1 %v3872_v11  ;;  %4723 = vst [vmem:[#allocation20_spill] sm:$0xff] %v3890_v7  ;;  %4724 = vst [vmem:[#allocation21_spill] sm:$0xff] %v3893_v60  ;;  %v1205_v24 = vld [vmem:[%s4660_s1 + $0x2b0] sm:$0xff]  ;;  %v1239_v0 = vld [vmem:[%s4660_s1 + $0x3c0] sm:$0xff] }
  0xac   : > { %1768 = vmatprep.subr.mxu0 %v4692_v2  ;;  %1989 = vmatprep.subr.mxu1 %v4692_v2 }
  0xad   : > { %1769 = vmatpush2.msra.mxu0 %v1206_v14  ;;  %1990 = vmatpush2.msra.mxu1 %v1240_v35  ;;  %v3907_v14 = vld [vmem:[%s3375_s6 + $0x12a] sm:$0xff]  ;;  %v3911_v35 = vld [vmem:[%s3375_s6 + $0x139] sm:$0xff] }
  0xae   : > { %1455 = vmatmul.mubr.f32.gmra.mxu0 %v3830_v50  ;;  %1680 = vmatmul.mubr.f32.gmra.mxu1 %v3886_v49  ;;  %4725 = vst [vmem:[#allocation22_spill] sm:$0xff] %v3907_v14  ;;  %4726 = vst [vmem:[#allocation23_spill] sm:$0xff] %v3911_v35  ;;  %v3914_v49 = vld [vmem:[%s3375_s6 + $0x150] sm:$0xff]  ;;  %v1238_v50 = vld [vmem:[%s4660_s1 + $0x3b8] sm:$0xff] }
  0xaf   : > { %1459 = vmatprep.mubr.f32.mxu0 %v3890_v7  ;;  %1684 = vmatprep.mubr.f32.mxu1 %v3893_v60  ;;  %4727 = vst [vmem:[#allocation24_spill] sm:$0xff] %v3914_v49  ;;  %v1204_v7 = vld [vmem:[%s4660_s1 + $0x2a8] sm:$0xff] }
  0xb0   : > { %1770 = vmatprep.subr.mxu0 %v4692_v2  ;;  %1991 = vmatprep.subr.mxu1 %v4692_v2 }
  0xb1   : > { %1771 = vmatpush2.msra.mxu0 %v1205_v24  ;;  %1992 = vmatpush2.msra.mxu1 %v1239_v0  ;;  %v3928_v24 = vld [vmem:[%s3375_s6 + $0x13a] sm:$0xff] }
  0xb2   : > { %1460 = vmatmul.mubr.f32.gmra.mxu0 %v3851_v39  ;;  %1685 = vmatmul.mubr.f32.gmra.mxu1 %v3907_v14  ;;  %4728 = vst [vmem:[#allocation25_spill] sm:$0xff] %v3928_v24  ;;  %v3932_v0 = vld [vmem:[%s3375_s6 + $0x141] sm:$0xff]  ;;  %v3935_v14 = vld [vmem:[%s3375_s6 + $0x158] sm:$0xff]  ;;  %v1237_v39 = vld [vmem:[%s4660_s1 + $0x3b0] sm:$0xff] }
  0xb3   : > { %1464 = vmatprep.mubr.f32.mxu0 %v3911_v35  ;;  %1689 = vmatprep.mubr.f32.mxu1 %v3914_v49  ;;  %4729 = vst [vmem:[#allocation26_spill] sm:$0xff] %v3932_v0  ;;  %v1203_v35 = vld [vmem:[%s4660_s1 + $0x2a0] sm:$0xff] }
  0xb4   : > { %1772 = vmatprep.subr.mxu0 %v4692_v2  ;;  %1993 = vmatprep.subr.mxu1 %v4692_v2 }
  0xb5   : > { %1773 = vmatpush2.msra.mxu0 %v1204_v7  ;;  %1994 = vmatpush2.msra.mxu1 %v1238_v50  ;;  %v3949_v7 = vld [vmem:[%s3375_s6 + $0x142] sm:$0xff]  ;;  %v3953_v50 = vld [vmem:[%s3375_s6 + $0x151] sm:$0xff] }
  0xb6   : > { %1465 = vmatmul.mubr.f32.gmra.mxu0 %v3872_v11  ;;  %1690 = vmatmul.mubr.f32.gmra.mxu1 %v3928_v24  ;;  %4730 = vst [vmem:[#allocation27_spill] sm:$0xff] %v3949_v7  ;;  %4731 = vst [vmem:[#allocation28_spill] sm:$0xff] %v3953_v50  ;;  %v3956_v24 = vld [vmem:[%s3375_s6 + $0x168] sm:$0xff] }
  0xb7   : > { %1469 = vmatprep.mubr.f32.mxu0 %v3932_v0  ;;  %1694 = vmatprep.mubr.f32.mxu1 %v3935_v14  ;;  %v1202_v0 = vld [vmem:[%s4660_s1 + $0x298] sm:$0xff]  ;;  %v1236_v11 = vld [vmem:[%s4660_s1 + $0x3a8] sm:$0xff] }
  0xb8   : > { %1774 = vmatprep.subr.mxu0 %v4692_v2  ;;  %1995 = vmatprep.subr.mxu1 %v4692_v2  ;;  %v3970_v2 = vld [vmem:[%s3375_s6 + $0x152] sm:$0xff] }
  0xb9   : > { %1775 = vmatpush2.msra.mxu0 %v1203_v35  ;;  %1996 = vmatpush2.msra.mxu1 %v1237_v39  ;;  %4732 = vst [vmem:[#allocation29_spill] sm:$0xff] %v3970_v2  ;;  %v4733_v39 = vmov 0.0   ;;  %v3974_v35 = vld [vmem:[%s3375_s6 + $0x159] sm:$0xff] }
  0xba   : > { %1470 = vmatmul.mubr.f32.gmra.mxu0 %v3893_v60  ;;  %1695 = vmatmul.mubr.f32.gmra.mxu1 %v3949_v7  ;;  %4734 = vst [vmem:[#allocation30_spill] sm:$0xff] %v3974_v35  ;;  %v3977_v7 = vld [vmem:[%s3375_s6 + $0x170] sm:$0xff]  ;;  %v1235_v60 = vld [vmem:[%s4660_s1 + $0x3a0] sm:$0xff] }
  0xbb   : > { %1474 = vmatprep.mubr.f32.mxu0 %v3953_v50  ;;  %1699 = vmatprep.mubr.f32.mxu1 %v3956_v24  ;;  %v1201_v50 = vld [vmem:[%s4660_s1 + $0x290] sm:$0xff] }
  0xbc   : > { %1776 = vmatprep.subr.mxu0 %v4733_v39  ;;  %1997 = vmatprep.subr.mxu1 %v4733_v39 }
  0xbd   : > { %1777 = vmatpush2.msra.mxu0 %v1202_v0  ;;  %1998 = vmatpush2.msra.mxu1 %v1236_v11  ;;  %v3996_v11 = vld [vmem:[%s3375_s6 + $0x169] sm:$0xff]  ;;  %v3999_v0 = vld [vmem:[%s3375_s6 + $0x180] sm:$0xff] }
  0xbe   : > { %1475 = vmatmul.mubr.f32.gmra.mxu0 %v3914_v49  ;;  %1700 = vmatmul.mubr.f32.gmra.mxu1 %v3970_v2  ;;  %4736 = vst [vmem:[#allocation32_spill] sm:$0xff] %v3999_v0  ;;  %v1200_v2 = vld [vmem:[%s4660_s1 + $0x288] sm:$0xff] }
  0xbf   : > { %1479 = vmatprep.mubr.f32.mxu0 %v3974_v35  ;;  %1704 = vmatprep.mubr.f32.mxu1 %v3977_v7  ;;  %v1234_v35 = vld [vmem:[%s4660_s1 + $0x398] sm:$0xff]  ;;  %v4012_v49 = vld [vmem:[%s3375_s6 + $0x16a] sm:$0xff] }
  0xc0   : > { %1778 = vmatprep.subr.mxu0 %v4733_v39  ;;  %1999 = vmatprep.subr.mxu1 %v4733_v39 }
  0xc1   : > { %1779 = vmatpush2.msra.mxu0 %v1201_v50  ;;  %2000 = vmatpush2.msra.mxu1 %v1235_v60  ;;  %v4017_v60 = vld [vmem:[%s3375_s6 + $0x171] sm:$0xff]  ;;  %v4020_v50 = vld [vmem:[%s3375_s6 + $0x188] sm:$0xff] }
  0xc2   : > { %1480 = vmatmul.mubr.f32.gmra.mxu0 %v3935_v14  ;;  %1705 = vmatmul.mubr.f32.gmra.mxu1 %v3991_v59  ;;  %4737 = vst [vmem:[#allocation33_spill] sm:$0xff] %v4020_v50  ;;  %v1233_v59 = vld [vmem:[%s4660_s1 + $0x390] sm:$0xff] }
  0xc3   : > { %1484 = vmatprep.mubr.f32.mxu0 %v3996_v11  ;;  %1709 = vmatprep.mubr.f32.mxu1 %v3999_v0  ;;  %v4030_v0 = vld [vmem:[%s3375_s6 + $0x172] sm:$0xff] }
  0xc4   : > { %1780 = vmatprep.subr.mxu0 %v4733_v39  ;;  %2001 = vmatprep.subr.mxu1 %v4733_v39 }
  0xc5   : > { %1781 = vmatpush2.msra.mxu0 %v1200_v2  ;;  %2002 = vmatpush2.msra.mxu1 %v1234_v35  ;;  %v1199_v2 = vld [vmem:[%s4660_s1 + $0x280] sm:$0xff]  ;;  %v1232_v35 = vld [vmem:[%s4660_s1 + $0x388] sm:$0xff] }
  0xc6   : > { %1485 = vmatmul.mubr.f32.gmra.mxu0 %v3956_v24  ;;  %1710 = vmatmul.mubr.f32.gmra.mxu1 %v4012_v49 }
  0xc7   : > { %2003 = vmatprep.subr.mxu1 %v4733_v39  ;;  %1489 = vmatprep.mubr.f32.mxu0 %v4017_v60 }
  0xc8   : > { %1714 = vmatprep.mubr.f32.mxu1 %v4020_v50  ;;  %2004 = vmatpush2.msra.mxu1 %v1233_v59  ;;  %v1231_v59 = vld [vmem:[%s4660_s1 + $0x380] sm:$0xff]  ;;  %v1262_v50 = vld [vmem:[%s4660_s1 + $0x478] sm:$0xff] }
  0xc9   : > { %1782 = vmatprep.subr.mxu0 %v4733_v39  ;;  %2005 = vmatprep.subr.mxu1 %v4733_v39 }
  0xca   : > { %1490 = vmatmul.mubr.f32.gmra.mxu0 %v3977_v7  ;;  %1715 = vmatmul.mubr.f32.gmra.mxu1 %v4030_v0 }
  0xcb   : > { %1783 = vmatpush2.msra.mxu0 %v1199_v2  ;;  %2006 = vmatpush2.msra.mxu1 %v1232_v35  ;;  %v1261_v2 = vld [vmem:[%s4660_s1 + $0x470] sm:$0xff] }
  0xcc   : > { %2007 = vmatprep.subr.mxu1 %v4733_v39  ;;  %1784 = vmatprep.mubr.f32.mxu0 %v3426_v16  ;;  %v1258_v16 = vld [vmem:[%s4660_s1 + $0x458] sm:$0xff] }
  0xcd   : > { %2008 = vmatpush2.msra.mxu1 %v1231_v59  ;;  %2009 = vmatprep.mubr.f32.mxu1 %v3450_v22  ;;  %v4751_v59 = vld [vmem:[#allocation16_spill] sm:$0xff] }
  0xce   : > { %1785 = vmatmul.mubr.f32.vlgmr.msra.gmra.mxu0 %v3411_v12  ;;  %2010 = vmatmul.mubr.f32.vlgmr.msra.gmra.mxu1 %v3415_v13  ;;  %v1260_v12 = vld [vmem:[%s4660_s1 + $0x468] sm:$0xff]  ;;  %v1259_v13 = vld [vmem:[%s4660_s1 + $0x460] sm:$0xff] }
  0xcf   : > { %2921 = vmatprep.subr.mxu0 %v1262_v50  ;;  %1789 = vmatprep.mubr.f32.mxu0 %v3446_v21  ;;  %v1255_v21 = vld [vmem:[%s4660_s1 + $0x440] sm:$0xff] }
  0xd0   : > { %2922 = vmatpush3.msra.mxu0 %v1262_v50  ;;  %2014 = vmatprep.mubr.f32.mxu1 %v3470_v27 }
  0xd1   : > { %2923 = vmatprep.subr.mxu0 %v1261_v2  ;;  %3001 = vmatprep.subr.mxu1 %v1262_v50 }
  0xd2   : > { %1790 = vmatmul.mubr.f32.gmra.mxu0 %v3431_v17  ;;  %2015 = vmatmul.mubr.f32.gmra.mxu1 %v3434_v18  ;;  %v1257_v17 = vld [vmem:[%s4660_s1 + $0x450] sm:$0xff]  ;;  %v1256_v18 = vld [vmem:[%s4660_s1 + $0x448] sm:$0xff] }
  0xd3   : > { %1794 = vmatprep.mubr.f32.mxu0 %v3466_v26  ;;  %2019 = vmatprep.mubr.f32.mxu1 %v3491_v32  ;;  %v1252_v26 = vld [vmem:[%s4660_s1 + $0x428] sm:$0xff] }
  0xd4   : > { %2924 = vmatpush3.msra.mxu0 %v1261_v2  ;;  %3017 = vmatpush3.msra.mxu1 %v1262_v50  ;;  %v4750_v50 = vld [vmem:[#allocation12_spill] sm:$0xff] }
  0xd5   : > { %2925 = vmatprep.subr.mxu0 %v1260_v12  ;;  %3002 = vmatprep.subr.mxu1 %v1261_v2 }
  0xd6   : > { %1795 = vmatmul.mubr.f32.gmra.mxu0 %v3450_v22  ;;  %2020 = vmatmul.mubr.f32.gmra.mxu1 %v3453_v23  ;;  %v1254_v22 = vld [vmem:[%s4660_s1 + $0x438] sm:$0xff]  ;;  %v1253_v23 = vld [vmem:[%s4660_s1 + $0x430] sm:$0xff] }
  0xd7   : > { %1799 = vmatprep.mubr.f32.mxu0 %v3487_v31  ;;  %2024 = vmatprep.mubr.f32.mxu1 %v3512_v37  ;;  %v1249_v31 = vld [vmem:[%s4660_s1 + $0x410] sm:$0xff] }
  0xd8   : > { %2926 = vmatpush3.msra.mxu0 %v1260_v12  ;;  %3018 = vmatpush3.msra.mxu1 %v1261_v2  ;;  %v4752_v2 = vld [vmem:[#allocation20_spill] sm:$0xff] }
  0xd9   : > { %2927 = vmatprep.subr.mxu0 %v1259_v13  ;;  %3003 = vmatprep.subr.mxu1 %v1260_v12 }
  0xda   : > { %1800 = vmatmul.mubr.f32.gmra.mxu0 %v3470_v27  ;;  %2025 = vmatmul.mubr.f32.gmra.mxu1 %v3473_v28  ;;  %v1251_v27 = vld [vmem:[%s4660_s1 + $0x420] sm:$0xff]  ;;  %v1250_v28 = vld [vmem:[%s4660_s1 + $0x418] sm:$0xff] }
  0xdb   : > { %1804 = vmatprep.mubr.f32.mxu0 %v3508_v36  ;;  %2029 = vmatprep.mubr.f32.mxu1 %v3533_v42  ;;  %v4164_v36 = vld [vmem:[%s4661_s2] ss:$0 sm:$0xff] }
  0xdc   : > { %2928 = vmatpush3.msra.mxu0 %v1259_v13  ;;  %3019 = vmatpush3.msra.mxu1 %v1260_v12 }
  0xdd   : > { %2929 = vmatprep.subr.mxu0 %v1258_v16  ;;  %3004 = vmatprep.subr.mxu1 %v1259_v13 }
  0xde   : > { %1805 = vmatmul.mubr.f32.gmra.mxu0 %v3491_v32  ;;  %2030 = vmatmul.mubr.f32.gmra.mxu1 %v3494_v33  ;;  %v1248_v32 = vld [vmem:[%s4660_s1 + $0x408] sm:$0xff]  ;;  %v1247_v33 = vld [vmem:[%s4660_s1 + $0x400] sm:$0xff] }
  0xdf   : > { %1809 = vmatprep.mubr.f32.mxu0 %v3529_v41  ;;  %2034 = vmatprep.mubr.f32.mxu1 %v3554_v47  ;;  %v4738_v41 = vld [vmem:[#allocation3_spill] sm:$0xff] }
  0xe0   : > { %2930 = vmatpush3.msra.mxu0 %v1258_v16  ;;  %3020 = vmatpush3.msra.mxu1 %v1259_v13 }
  0xe1   : > { %2931 = vmatprep.subr.mxu0 %v1257_v17  ;;  %3005 = vmatprep.subr.mxu1 %v1258_v16 }
  0xe2   : > { %1810 = vmatmul.mubr.f32.gmra.mxu0 %v3512_v37  ;;  %2035 = vmatmul.mubr.f32.gmra.mxu1 %v3515_v38 }
  0xe3   : > { %1814 = vmatprep.mubr.f32.mxu0 %v3550_v46  ;;  %2039 = vmatprep.mubr.f32.mxu1 %v3575_v52  ;;  %v4740_v46 = vld [vmem:[#allocation8_spill] sm:$0xff] }
  0xe4   : > { %2932 = vmatpush3.msra.mxu0 %v1257_v17  ;;  %3021 = vmatpush3.msra.mxu1 %v1258_v16 }
  0xe5   : > { %2933 = vmatprep.subr.mxu0 %v1256_v18  ;;  %3006 = vmatprep.subr.mxu1 %v1257_v17 }
  0xe6   : > { %1815 = vmatmul.mubr.f32.gmra.mxu0 %v3533_v42  ;;  %2040 = vmatmul.mubr.f32.gmra.mxu1 %v3536_v43  ;;  %v4739_v43 = vld [vmem:[#allocation5_spill] sm:$0xff] }
  0xe7   : > { %1819 = vmatprep.mubr.f32.mxu0 %v3571_v51  ;;  %2044 = vmatprep.mubr.f32.mxu1 %v3596_v57 }
  0xe8   : > { %2934 = vmatpush3.msra.mxu0 %v1256_v18  ;;  %3022 = vmatpush3.msra.mxu1 %v1257_v17 }
  0xe9   : > { %2935 = vmatprep.subr.mxu0 %v1255_v21  ;;  %3007 = vmatprep.subr.mxu1 %v1256_v18 }
  0xea   : > { %1820 = vmatmul.mubr.f32.gmra.mxu0 %v3554_v47  ;;  %2045 = vmatmul.mubr.f32.gmra.mxu1 %v3557_v48 }
  0xeb   : > { %1824 = vmatprep.mubr.f32.mxu0 %v3592_v56  ;;  %2049 = vmatprep.mubr.f32.mxu1 %v3617_v62  ;;  %v4741_v56 = vld [vmem:[#allocation4_spill] sm:$0xff] }
  0xec   : > { %2936 = vmatpush3.msra.mxu0 %v1255_v21  ;;  %3023 = vmatpush3.msra.mxu1 %v1256_v18 }
  0xed   : > { %2937 = vmatprep.subr.mxu0 %v1254_v22  ;;  %3008 = vmatprep.subr.mxu1 %v1255_v21 }
  0xee   : > { %1825 = vmatmul.mubr.f32.gmra.mxu0 %v3575_v52  ;;  %2050 = vmatmul.mubr.f32.gmra.mxu1 %v3578_v53 }
  0xef   : > { %1829 = vmatprep.mubr.f32.mxu0 %v3613_v61  ;;  %2054 = vmatprep.mubr.f32.mxu1 %v3638_v4  ;;  %v4743_v61 = vld [vmem:[#allocation11_spill] sm:$0xff] }
  0xf0   : > { %2938 = vmatpush3.msra.mxu0 %v1254_v22  ;;  %3024 = vmatpush3.msra.mxu1 %v1255_v21  ;;  %v4753_v21 = vld [vmem:[#allocation15_spill] sm:$0xff] }
  0xf1   : > { %2939 = vmatprep.subr.mxu0 %v1253_v23  ;;  %3009 = vmatprep.subr.mxu1 %v1254_v22 }
  0xf2   : > { %1830 = vmatmul.mubr.f32.gmra.mxu0 %v3596_v57  ;;  %2055 = vmatmul.mubr.f32.gmra.mxu1 %v3599_v58  ;;  %v4742_v58 = vld [vmem:[#allocation7_spill] sm:$0xff] }
  0xf3   : > { %1834 = vmatprep.mubr.f32.mxu0 %v3634_v3  ;;  %2059 = vmatprep.mubr.f32.mxu1 %v3659_v9 }
  0xf4   : > { %2940 = vmatpush3.msra.mxu0 %v1253_v23  ;;  %3025 = vmatpush3.msra.mxu1 %v1254_v22 }
  0xf5   : > { %2941 = vmatprep.subr.mxu0 %v1252_v26  ;;  %3010 = vmatprep.subr.mxu1 %v1253_v23 }
  0xf6   : > { %1835 = vmatmul.mubr.f32.gmra.mxu0 %v3617_v62  ;;  %2060 = vmatmul.mubr.f32.gmra.mxu1 %v3620_v63 }
  0xf7   : > { %1839 = vmatprep.mubr.f32.mxu0 %v3655_v8  ;;  %2064 = vmatprep.mubr.f32.mxu1 %v3680_v19  ;;  %v4744_v8 = vld [vmem:[#allocation6_spill] sm:$0xff] }
  0xf8   : > { %2942 = vmatpush3.msra.mxu0 %v1252_v26  ;;  %3026 = vmatpush3.msra.mxu1 %v1253_v23  ;;  %v4754_v23 = vld [vmem:[#allocation19_spill] sm:$0xff] }
  0xf9   : > { %2943 = vmatprep.subr.mxu0 %v1251_v27  ;;  %3011 = vmatprep.subr.mxu1 %v1252_v26 }
  0xfa   : > { %1840 = vmatmul.mubr.f32.gmra.mxu0 %v3638_v4  ;;  %2065 = vmatmul.mubr.f32.gmra.mxu1 %v3641_v5 }
  0xfb   : > { %1844 = vmatprep.mubr.f32.mxu0 %v3676_v15  ;;  %2069 = vmatprep.mubr.f32.mxu1 %v3701_v30  ;;  %v4746_v15 = vld [vmem:[#allocation14_spill] sm:$0xff] }
  0xfc   : > { %2944 = vmatpush3.msra.mxu0 %v1251_v27  ;;  %3027 = vmatpush3.msra.mxu1 %v1252_v26  ;;  %v4755_v26 = vld [vmem:[#allocation23_spill] sm:$0xff] }
  0xfd   : > { %2945 = vmatprep.subr.mxu0 %v1250_v28  ;;  %3012 = vmatprep.subr.mxu1 %v1251_v27 }
  0xfe   : > { %1845 = vmatmul.mubr.f32.gmra.mxu0 %v3659_v9  ;;  %2070 = vmatmul.mubr.f32.gmra.mxu1 %v3662_v10  ;;  %v4745_v10 = vld [vmem:[#allocation10_spill] sm:$0xff] }
  0xff   : > { %1849 = vmatprep.mubr.f32.mxu0 %v3697_v29  ;;  %2074 = vmatprep.mubr.f32.mxu1 %v3722_v44 }
 0x100   : > { %2946 = vmatpush3.msra.mxu0 %v1250_v28  ;;  %3028 = vmatpush3.msra.mxu1 %v1251_v27 }
 0x101   : > { %2947 = vmatprep.subr.mxu0 %v1249_v31  ;;  %3013 = vmatprep.subr.mxu1 %v1250_v28 }
 0x102   : > { %1850 = vmatmul.mubr.f32.gmra.mxu0 %v3680_v19  ;;  %2075 = vmatmul.mubr.f32.gmra.mxu1 %v3683_v20 }
 0x103   : > { %1854 = vmatprep.mubr.f32.mxu0 %v3718_v40  ;;  %2079 = vmatprep.mubr.f32.mxu1 %v3743_v55  ;;  %v4747_v40 = vld [vmem:[#allocation9_spill] sm:$0xff] }
 0x104   : > { %2948 = vmatpush3.msra.mxu0 %v1249_v31  ;;  %3029 = vmatpush3.msra.mxu1 %v1250_v28 }
 0x105   : > { %2949 = vmatprep.subr.mxu0 %v1248_v32  ;;  %3014 = vmatprep.subr.mxu1 %v1249_v31 }
 0x106   : > { %1855 = vmatmul.mubr.f32.gmra.mxu0 %v3701_v30  ;;  %2080 = vmatmul.mubr.f32.gmra.mxu1 %v3704_v34 }
 0x107   : > { %1859 = vmatprep.mubr.f32.mxu0 %v3739_v54  ;;  %2084 = vmatprep.mubr.f32.mxu1 %v3764_v6  ;;  %v4749_v54 = vld [vmem:[#allocation17_spill] sm:$0xff] }
 0x108   : > { %2950 = vmatpush3.msra.mxu0 %v1248_v32  ;;  %3030 = vmatpush3.msra.mxu1 %v1249_v31 }
 0x109   : > { %2951 = vmatprep.subr.mxu0 %v1247_v33  ;;  %3015 = vmatprep.subr.mxu1 %v1248_v32 }
 0x10a   : > { %1860 = vmatmul.mubr.f32.gmra.mxu0 %v3722_v44  ;;  %2085 = vmatmul.mubr.f32.gmra.mxu1 %v3725_v45  ;;  %v4748_v45 = vld [vmem:[#allocation13_spill] sm:$0xff] }
 0x10b   : > { %1864 = vmatprep.mubr.f32.mxu0 %v3760_v1  ;;  %2089 = vmatprep.mubr.f32.mxu1 %v3785_v25 }
 0x10c   : > { %2952 = vmatpush3.msra.mxu0 %v1247_v33  ;;  %3031 = vmatpush3.msra.mxu1 %v1248_v32 }
 0x10d   : > { %3016 = vmatprep.subr.mxu1 %v1247_v33 }
 0x10e   : > { %v1336_v37 = vpop.f32.mrf.mxu0  ;;  %v1561_v38 = vpop.f32.mrf.mxu1  ;;  %1865 = vmatmul.mubr.f32.gmra.mxu0 %v3743_v55  ;;  %2090 = vmatmul.mubr.f32.gmra.mxu1 %v4738_v41  ;;  %v4757_v41 = vld [vmem:[#allocation22_spill] sm:$0xff] }
 0x10f   : > { %v1337_v42 = vadd.f32 %v4164_v36, %v1336_v37  ;;  %1869 = vmatprep.mubr.f32.mxu0 %v4739_v43  ;;  %2094 = vmatprep.mubr.f32.mxu1 %v4740_v46  ;;  %v4756_v37 = vld [vmem:[#allocation18_spill] sm:$0xff] }
 0x110   : > { %v1338_v47 = vpop.f32.mrf.mxu0  ;;  %v1563_v48 = vpop.f32.mrf.mxu1  ;;  %3032 = vmatpush3.msra.mxu1 %v1247_v33 }
 0x111   : > { %v4171_v51 = vadd.f32 %v1561_v38, %v1337_v42  ;;  %v4758_v42 = vld [vmem:[#allocation26_spill] sm:$0xff] }
 0x112   : > { %v1341_v52 = vpop.f32.mrf.mxu0  ;;  %v1566_v53 = vpop.f32.mrf.mxu1  ;;  %1870 = vmatmul.mubr.f32.gmra.mxu0 %v3764_v6  ;;  %2095 = vmatmul.mubr.f32.gmra.mxu1 %v4741_v56 }
 0x113   : > { %v1342_v57 = vadd.f32 %v4164_v36, %v1341_v52  ;;  %1874 = vmatprep.mubr.f32.mxu0 %v4742_v58  ;;  %2099 = vmatprep.mubr.f32.mxu1 %v4743_v61  ;;  %v4761_v58 = vld [vmem:[#allocation28_spill] sm:$0xff] }
 0x114   : > { %v1343_v62 = vpop.f32.mrf.mxu0  ;;  %v1568_v63 = vpop.f32.mrf.mxu1 }
 0x115   : > { %v4178_v3 = vadd.f32 %v1566_v53, %v1342_v57  ;;  %v4759_v53 = vld [vmem:[#allocation21_spill] sm:$0xff] }
 0x116   : > { %v1346_v4 = vpop.f32.mrf.mxu0  ;;  %v1571_v5 = vpop.f32.mrf.mxu1  ;;  %1875 = vmatmul.mubr.f32.gmra.mxu0 %v3785_v25  ;;  %2100 = vmatmul.mubr.f32.gmra.mxu1 %v4744_v8  ;;  %v4760_v57 = vld [vmem:[#allocation25_spill] sm:$0xff]  ;;  %v4762_v8 = vld [vmem:[#allocation24_spill] sm:$0xff] }
 0x117   : > { %v1347_v9 = vadd.f32 %v4164_v36, %v1346_v4  ;;  %1879 = vmatprep.mubr.f32.mxu0 %v4745_v10  ;;  %2104 = vmatprep.mubr.f32.mxu1 %v4746_v15  ;;  %v4763_v10 = vld [vmem:[#allocation27_spill] sm:$0xff] }
 0x118   : > { %v1348_v19 = vpop.f32.mrf.mxu0  ;;  %v1573_v20 = vpop.f32.mrf.mxu1 }
 0x119   : > { %v4185_v29 = vadd.f32 %v1571_v5, %v1347_v9 }
 0x11a   : > { %v1351_v30 = vpop.f32.mrf.mxu0  ;;  %v1576_v34 = vpop.f32.mrf.mxu1  ;;  %1880 = vmatmul.mubr.f32.gmra.mxu0 %v4740_v46  ;;  %2105 = vmatmul.mubr.f32.gmra.mxu1 %v4747_v40 }
 0x11b   : > { %v1352_v44 = vadd.f32 %v4164_v36, %v1351_v30  ;;  %1884 = vmatprep.mubr.f32.mxu0 %v4748_v45  ;;  %2109 = vmatprep.mubr.f32.mxu1 %v4749_v54  ;;  %v4765_v45 = vld [vmem:[#allocation29_spill] sm:$0xff] }
 0x11c   : > { %v1353_v55 = vpop.f32.mrf.mxu0  ;;  %v1578_v1 = vpop.f32.mrf.mxu1 }
 0x11d   : > { %v4192_v6 = vadd.f32 %v1576_v34, %v1352_v44 }
 0x11e   : > { %v1356_v25 = vpop.f32.mrf.mxu0  ;;  %v1581_v39 = vpop.f32.mrf.mxu1  ;;  %1885 = vmatmul.mubr.f32.gmra.mxu0 %v4743_v61  ;;  %2110 = vmatmul.mubr.f32.gmra.mxu1 %v4750_v50 }
 0x11f   : > { %v1357_v35 = vadd.f32 %v4164_v36, %v1356_v25  ;;  %1889 = vmatprep.mubr.f32.mxu0 %v4751_v59  ;;  %2114 = vmatprep.mubr.f32.mxu1 %v4752_v2 }
 0x120   : > { %v1358_v12 = vpop.f32.mrf.mxu0  ;;  %v1583_v13 = vpop.f32.mrf.mxu1 }
 0x121   : > { %v4199_v16 = vadd.f32 %v1581_v39, %v1357_v35 }
 0x122   : > { %v1361_v17 = vpop.f32.mrf.mxu0  ;;  %v1586_v18 = vpop.f32.mrf.mxu1  ;;  %1890 = vmatmul.mubr.f32.gmra.mxu0 %v4746_v15  ;;  %2115 = vmatmul.mubr.f32.gmra.mxu1 %v4753_v21  ;;  %v4764_v15 = vld [vmem:[#allocation30_spill] sm:$0xff] }
 0x123   : > { %v1362_v22 = vadd.f32 %v4164_v36, %v1361_v17  ;;  %1894 = vmatprep.mubr.f32.mxu0 %v4754_v23  ;;  %2119 = vmatprep.mubr.f32.mxu1 %v4755_v26 }
 0x124   : > { %v1363_v27 = vpop.f32.mrf.mxu0  ;;  %v1588_v28 = vpop.f32.mrf.mxu1 }
 0x125   : > { %v4206_v31 = vadd.f32 %v1586_v18, %v1362_v22  ;;  %v2834_v22 = vld [vmem:[%s3375_s6 + $0x189] sm:$0xff] }
 0x126   : > { %v1366_v32 = vpop.f32.mrf.mxu0  ;;  %v1591_v33 = vpop.f32.mrf.mxu1  ;;  %1895 = vmatmul.mubr.f32.gmra.mxu0 %v4749_v54  ;;  %2120 = vmatmul.mubr.f32.gmra.mxu1 %v4756_v37  ;;  %v4767_v28 = vld [vmem:[#allocation32_spill] sm:$0xff]  ;;  %v2835_v37 = vld [vmem:[%s3375_s6 + $0x199] sm:$0xff] }
 0x127   : > { %v1367_v38 = vadd.f32 %v4164_v36, %v1366_v32  ;;  %1899 = vmatprep.mubr.f32.mxu0 %v4757_v41  ;;  %2124 = vmatprep.mubr.f32.mxu1 %v4758_v42 }
 0x128   : > { %v1368_v43 = vpop.f32.mrf.mxu0  ;;  %v1593_v46 = vpop.f32.mrf.mxu1 }
 0x129   : > { %v4213_v47 = vadd.f32 %v1591_v33, %v1367_v38  ;;  %v4256_v33 = vld [vmem:[%s3375_s6 + $0x182] sm:$0xff] }
 0x12a   : > { %v1371_v48 = vpop.f32.mrf.mxu0  ;;  %v1596_v52 = vpop.f32.mrf.mxu1  ;;  %1900 = vmatmul.mubr.f32.gmra.mxu0 %v4752_v2  ;;  %2125 = vmatmul.mubr.f32.gmra.mxu1 %v4759_v53  ;;  %v2833_v2 = vld [vmem:[%s3375_s6 + $0x181] sm:$0xff] }
 0x12b   : > { %v1372_v56 = vadd.f32 %v4164_v36, %v1371_v48  ;;  %1904 = vmatprep.mubr.f32.mxu0 %v4760_v57  ;;  %2129 = vmatprep.mubr.f32.mxu1 %v4761_v58  ;;  %v2836_v53 = vld [vmem:[%s3375_s6 + $0x1a1] sm:$0xff] }
 0x12c   : > { %v1373_v61 = vpop.f32.mrf.mxu0  ;;  %v1598_v62 = vpop.f32.mrf.mxu1 }
 0x12d   : > { %v4220_v63 = vadd.f32 %v1596_v52, %v1372_v56  ;;  %v4267_v52 = vld [vmem:[%s3375_s6 + $0x18a] sm:$0xff]  ;;  %v2804_v61 = vld [vmem:[%s3375_s6 + $0x1a0] sm:$0xff] }
 0x12e   : > { %v1376_v4 = vpop.f32.mrf.mxu0  ;;  %v1601_v5 = vpop.f32.mrf.mxu1  ;;  %1905 = vmatmul.mubr.f32.gmra.mxu0 %v4755_v26  ;;  %2130 = vmatmul.mubr.f32.gmra.mxu1 %v4762_v8  ;;  %v2853_v8 = vld [vmem:[%s3375_s6 + $0xf2] sm:$0xff] }
 0x12f   : > { %v1377_v9 = vadd.f32 %v4164_v36, %v1376_v4  ;;  %1909 = vmatprep.mubr.f32.mxu0 %v4763_v10  ;;  %2134 = vmatprep.mubr.f32.mxu1 %v4764_v15 }
 0x130   : > { %v1378_v19 = vpop.f32.mrf.mxu0  ;;  %v1603_v20 = vpop.f32.mrf.mxu1 }
 0x131   : > { %v4227_v30 = vadd.f32 %v1601_v5, %v1377_v9  ;;  %v2837_v5 = vld [vmem:[%s3375_s6 + $0x32] sm:$0xff]  ;;  %v2838_v20 = vld [vmem:[%s3375_s6 + $0x3a] sm:$0xff] }
 0x132   : > { %v1381_v34 = vpop.f32.mrf.mxu0  ;;  %v1606_v40 = vpop.f32.mrf.mxu1  ;;  %1910 = vmatmul.mubr.f32.gmra.mxu0 %v4758_v42  ;;  %2135 = vmatmul.mubr.f32.gmra.mxu1 %v3935_v14  ;;  %v4766_v14 = vld [vmem:[#allocation31_spill] sm:$0xff] }
 0x133   : > { %v1382_v44 = vadd.f32 %v4164_v36, %v1381_v34  ;;  %1914 = vmatprep.mubr.f32.mxu0 %v4765_v45  ;;  %2139 = vmatprep.mubr.f32.mxu1 %v3996_v11  ;;  %v2854_v34 = vld [vmem:[%s3375_s6 + $0xfa] sm:$0xff]  ;;  %v2839_v45 = vld [vmem:[%s3375_s6 + $0x4a] sm:$0xff] }
 0x134   : > { %v1383_v54 = vpop.f32.mrf.mxu0  ;;  %v1608_v55 = vpop.f32.mrf.mxu1 }
 0x135   : > { %v4234_v1 = vadd.f32 %v1606_v40, %v1382_v44  ;;  %v2855_v54 = vld [vmem:[%s3375_s6 + $0x10a] sm:$0xff] }
 0x136   : > { %v1386_v25 = vpop.f32.mrf.mxu0  ;;  %v1611_v39 = vpop.f32.mrf.mxu1  ;;  %1915 = vmatmul.mubr.f32.gmra.mxu0 %v4761_v58  ;;  %2140 = vmatmul.mubr.f32.gmra.mxu1 %v3956_v24 }
 0x137   : > { %v1387_v50 = vadd.f32 %v4164_v36, %v1386_v25  ;;  %1919 = vmatprep.mubr.f32.mxu0 %v4766_v14  ;;  %2144 = vmatprep.mubr.f32.mxu1 %v4017_v60  ;;  %v2840_v14 = vld [vmem:[%s3375_s6 + $0x52] sm:$0xff] }
 0x138   : > { %v1388_v35 = vpop.f32.mrf.mxu0  ;;  %v1613_v59 = vpop.f32.mrf.mxu1 }
 0x139   : > { %v4242_v12 = vadd.f32 %v1611_v39, %v1387_v50  ;;  %v2856_v35 = vld [vmem:[%s3375_s6 + $0x112] sm:$0xff] }
 0x13a   : > { %v1391_v13 = vpop.f32.mrf.mxu0  ;;  %v1616_v17 = vpop.f32.mrf.mxu1  ;;  %1920 = vmatmul.mubr.f32.gmra.mxu0 %v4764_v15  ;;  %2145 = vmatmul.mubr.f32.gmra.mxu1 %v3977_v7 }
 0x13b   : > { %v1392_v24 = vadd.f32 %v4164_v36, %v1391_v13  ;;  %1924 = vmatprep.mubr.f32.mxu0 %v4012_v49  ;;  %2149 = vmatprep.mubr.f32.mxu1 %v2833_v2  ;;  %v2841_v13 = vld [vmem:[%s3375_s6 + $0x62] sm:$0xff] }
 0x13c   : > { %v1393_v18 = vpop.f32.mrf.mxu0  ;;  %v1618_v21 = vpop.f32.mrf.mxu1 }
 0x13d   : > { %v4249_v23 = vadd.f32 %v1616_v17, %v1392_v24  ;;  %v2857_v17 = vld [vmem:[%s3375_s6 + $0x122] sm:$0xff] }
 0x13e   : > { %v1396_v26 = vpop.f32.mrf.mxu0  ;;  %v1621_v27 = vpop.f32.mrf.mxu1  ;;  %1925 = vmatmul.mubr.f32.gmra.mxu0 %v3996_v11  ;;  %2150 = vmatmul.mubr.f32.gmra.mxu1 %v4767_v28  ;;  %v4768_v11 = vld [vmem:[#allocation33_spill] sm:$0xff] }
 0x13f   : > { %v1397_v7 = vadd.f32 %v4164_v36, %v1396_v26  ;;  %1929 = vmatprep.mubr.f32.mxu0 %v4030_v0  ;;  %2154 = vmatprep.mubr.f32.mxu1 %v2834_v22  ;;  %v2803_v0 = vld [vmem:[%s3375_s6 + $0x198] sm:$0xff]  ;;  %v2842_v26 = vld [vmem:[%s3375_s6 + $0x6a] sm:$0xff] }
 0x140   : > { %v1398_v49 = vpop.f32.mrf.mxu0  ;;  %v1623_v32 = vpop.f32.mrf.mxu1 }
 0x141   : > { %v4259_v38 = vadd.f32 %v1621_v27, %v1397_v7  ;;  %v2858_v27 = vld [vmem:[%s3375_s6 + $0x12a] sm:$0xff]  ;;  %v2843_v49 = vld [vmem:[%s3375_s6 + $0x7a] sm:$0xff] }
 0x142   : > { %v1401_v41 = vpop.f32.mrf.mxu0  ;;  %v1626_v42 = vpop.f32.mrf.mxu1  ;;  %1930 = vmatmul.mubr.f32.gmra.mxu0 %v4017_v60  ;;  %2155 = vmatmul.mubr.f32.gmra.mxu1 %v4768_v11  ;;  %v2859_v32 = vld [vmem:[%s3375_s6 + $0x13a] sm:$0xff] }
 0x143   : > { %v1402_v43 = vadd.f32 %v4164_v36, %v1401_v41  ;;  %1934 = vmatprep.mubr.f32.mxu0 %v4256_v33  ;;  %2159 = vmatprep.mubr.f32.mxu1 %v2835_v37 }
 0x144   : > { %v1403_v46 = vpop.f32.mrf.mxu0  ;;  %v1628_v48 = vpop.f32.mrf.mxu1 }
 0x145   : > { %v4270_v56 = vadd.f32 %v1626_v42, %v1402_v43  ;;  %v2844_v43 = vld [vmem:[%s3375_s6 + $0x82] sm:$0xff] }
 0x146   : > { %v1406_v57 = vpop.f32.mrf.mxu0  ;;  %v1631_v60 = vpop.f32.mrf.mxu1  ;;  %1935 = vmatmul.mubr.f32.gmra.mxu0 %v2833_v2  ;;  %2160 = vmatmul.mubr.f32.gmra.mxu1 %v2803_v0  ;;  %v2860_v0 = vld [vmem:[%s3375_s6 + $0x142] sm:$0xff] }
 0x147   : > { %v1407_v58 = vadd.f32 %v4164_v36, %v1406_v57  ;;  %1939 = vmatprep.mubr.f32.mxu0 %v4267_v52  ;;  %2164 = vmatprep.mubr.f32.mxu1 %v2836_v53  ;;  %v2845_v53 = vld [vmem:[%s3375_s6 + $0x92] sm:$0xff] }
 0x148   : > { %v1408_v62 = vpop.f32.mrf.mxu0  ;;  %v1633_v4 = vpop.f32.mrf.mxu1  ;;  %v2861_v57 = vld [vmem:[%s3375_s6 + $0x152] sm:$0xff] }
 0x149   : > { %v4277_v9 = vadd.f32 %v1631_v60, %v1407_v58  ;;  %v2846_v4 = vld [vmem:[%s3375_s6 + $0x9a] sm:$0xff] }
 0x14a   : > { %v1411_v10 = vpop.f32.mrf.mxu0  ;;  %v1636_v15 = vpop.f32.mrf.mxu1  ;;  %1940 = vmatmul.mubr.f32.gmra.mxu0 %v2834_v22  ;;  %2165 = vmatmul.mubr.f32.gmra.mxu1 %v2804_v61 }
 0x14b   : > { %v1412_v19 = vadd.f32 %v4164_v36, %v1411_v10  ;;  %2953 = vmatprep.mubr.f32.mxu0 %v2837_v5  ;;  %2977 = vmatprep.mubr.f32.mxu1 %v2853_v8  ;;  %v2862_v5 = vld [vmem:[%s3375_s6 + $0x15a] sm:$0xff] }
 0x14c   : > { %v1413_v40 = vpop.f32.mrf.mxu0  ;;  %v1638_v44 = vpop.f32.mrf.mxu1 }
 0x14d   : > { %v4284_v55 = vadd.f32 %v1636_v15, %v1412_v19  ;;  %v2847_v15 = vld [vmem:[%s3375_s6 + $0xaa] sm:$0xff] }
 0x14e   : > { %v1416_v25 = vpop.f32.mrf.mxu0  ;;  %v1641_v39 = vpop.f32.mrf.mxu1  ;;  %2954 = vmatmul.mubr.f32.vlgmr.msra.gmra.mxu0 %v2838_v20  ;;  %2978 = vmatmul.mubr.f32.vlgmr.msra.gmra.mxu1 %v2854_v34  ;;  %v2863_v19 = vld [vmem:[%s3375_s6 + $0x16a] sm:$0xff] }
 0x14f   : > { %v1417_v50 = vadd.f32 %v4164_v36, %v1416_v25  ;;  %2956 = vmatprep.mubr.f32.mxu0 %v2839_v45  ;;  %2980 = vmatprep.mubr.f32.mxu1 %v2855_v54  ;;  %v2848_v45 = vld [vmem:[%s3375_s6 + $0xb2] sm:$0xff] }
 0x150   : > { %v1418_v59 = vpop.f32.mrf.mxu0  ;;  %v1643_v2 = vpop.f32.mrf.mxu1  ;;  %v2864_v54 = vld [vmem:[%s3375_s6 + $0x172] sm:$0xff] }
 0x151   : > { %v4291_v24 = vadd.f32 %v1641_v39, %v1417_v50  ;;  %v2849_v50 = vld [vmem:[%s3375_s6 + $0xc2] sm:$0xff] }
 0x152   : > { %v1421_v18 = vpop.f32.mrf.mxu0  ;;  %v1646_v21 = vpop.f32.mrf.mxu1  ;;  %2957 = vmatmul.mubr.f32.gmra.mxu0 %v2840_v14  ;;  %2981 = vmatmul.mubr.f32.gmra.mxu1 %v2856_v35 }
 0x153   : > { %v1422_v22 = vadd.f32 %v4164_v36, %v1421_v18  ;;  %2959 = vmatprep.mubr.f32.mxu0 %v2841_v13  ;;  %2983 = vmatprep.mubr.f32.mxu1 %v2857_v17  ;;  %v2850_v13 = vld [vmem:[%s3375_s6 + $0xca] sm:$0xff] }
 0x154   : > { %v1423_v28 = vpop.f32.mrf.mxu0  ;;  %v1648_v7 = vpop.f32.mrf.mxu1 }
 0x155   : > { %v4298_v37 = vadd.f32 %v1646_v21, %v1422_v22  ;;  %v2851_v21 = vld [vmem:[%s3375_s6 + $0xda] sm:$0xff] }
 0x156   : > { %v1426_v41 = vpop.f32.mrf.mxu0  ;;  %v1651_v42 = vpop.f32.mrf.mxu1  ;;  %2960 = vmatmul.mubr.f32.gmra.mxu0 %v2842_v26  ;;  %2984 = vmatmul.mubr.f32.gmra.mxu1 %v2858_v27  ;;  %v2867_v22 = vld [vmem:[%s3375_s6 + $0x19a] sm:$0xff] }
 0x157   : > { %v1427_v11 = vadd.f32 %v4164_v36, %v1426_v41  ;;  %2962 = vmatprep.mubr.f32.mxu0 %v2843_v49  ;;  %2986 = vmatprep.mubr.f32.mxu1 %v2859_v32  ;;  %v2852_v49 = vld [vmem:[%s3375_s6 + $0xe2] sm:$0xff] }
 0x158   : > { %v1428_v46 = vpop.f32.mrf.mxu0  ;;  %v1653_v48 = vpop.f32.mrf.mxu1  ;;  %v2868_v32 = vld [vmem:[%s3375_s6 + $0x1a2] sm:$0xff]  ;;  %s2872_s6 = sshll.u32 %s4788_s15, 8 }
 0x159   : > { %v4305_v60 = vadd.f32 %v1651_v42, %v1427_v11  ;;  %s4468_s11 = scalar_lea.vmem %s4662_s3, %s2872_s6 }
 0x15a   : > { %v1431_v58 = vpop.f32.mrf.mxu0  ;;  %v1656_v61 = vpop.f32.mrf.mxu1  ;;  %2963 = vmatmul.mubr.f32.gmra.mxu0 %v2844_v43  ;;  %2987 = vmatmul.mubr.f32.gmra.mxu1 %v2860_v0 }
 0x15b   : > { %v1432_v62 = vadd.f32 %v4164_v36, %v1431_v58  ;;  %2965 = vmatprep.mubr.f32.mxu0 %v2845_v53  ;;  %2989 = vmatprep.mubr.f32.mxu1 %v2861_v57 }
 0x15c   : > { %v1433_v8 = vpop.f32.mrf.mxu0  ;;  %v1658_v10 = vpop.f32.mrf.mxu1 }
 0x15d   : > { %v4312_v20 = vadd.f32 %v1656_v61, %v1432_v62 }
 0x15e   : > { %v1436_v34 = vpop.f32.mrf.mxu0  ;;  %v1661_v40 = vpop.f32.mrf.mxu1  ;;  %2966 = vmatmul.mubr.f32.gmra.mxu0 %v2846_v4  ;;  %2990 = vmatmul.mubr.f32.gmra.mxu1 %v2862_v5 }
 0x15f   : > { %v1437_v44 = vadd.f32 %v4164_v36, %v1436_v34  ;;  %2968 = vmatprep.mubr.f32.mxu0 %v2847_v15  ;;  %2992 = vmatprep.mubr.f32.mxu1 %v2863_v19 }
 0x160   : > { %v1438_v25 = vpop.f32.mrf.mxu0  ;;  %v1663_v39 = vpop.f32.mrf.mxu1 }
 0x161   : > { %v4318_v14 = vadd.f32 %v1661_v40, %v1437_v44 }
 0x162   : > { %v1441_v35 = vpop.f32.mrf.mxu0  ;;  %v1666_v59 = vpop.f32.mrf.mxu1  ;;  %2969 = vmatmul.mubr.f32.gmra.mxu0 %v2848_v45  ;;  %2993 = vmatmul.mubr.f32.gmra.mxu1 %v2864_v54 }
 0x163   : > { %v1442_v2 = vadd.f32 %v4164_v36, %v1441_v35  ;;  %2971 = vmatprep.mubr.f32.mxu0 %v2849_v50  ;;  %2995 = vmatprep.mubr.f32.mxu1 %v4256_v33 }
 0x164   : > { %v1443_v17 = vpop.f32.mrf.mxu0  ;;  %v1668_v18 = vpop.f32.mrf.mxu1 }
 0x165   : > { %v4325_v26 = vadd.f32 %v1666_v59, %v1442_v2 }
 0x166   : > { %v1446_v27 = vpop.f32.mrf.mxu0  ;;  %v1671_v28 = vpop.f32.mrf.mxu1  ;;  %2972 = vmatmul.mubr.f32.gmra.mxu0 %v2850_v13  ;;  %2996 = vmatmul.mubr.f32.gmra.mxu1 %v4267_v52 }
 0x167   : > { %v1447_v7 = vadd.f32 %v4164_v36, %v1446_v27  ;;  %2974 = vmatprep.mubr.f32.mxu0 %v2851_v21  ;;  %2998 = vmatprep.mubr.f32.mxu1 %v2867_v22 }
 0x168   : > { %v1448_v41 = vpop.f32.mrf.mxu0  ;;  %v1673_v33 = vpop.f32.mrf.mxu1 }
 0x169   : > { %v4331_v42 = vadd.f32 %v1671_v28, %v1447_v7 }
 0x16a   : > { %v1451_v11 = vpop.f32.mrf.mxu0  ;;  %v1676_v43 = vpop.f32.mrf.mxu1  ;;  %2975 = vmatmul.mubr.f32.gmra.mxu0 %v2852_v49  ;;  %2999 = vmatmul.mubr.f32.gmra.mxu1 %v2868_v32 }
 0x16b   : > { %v1452_v0 = vadd.f32 %v4164_v36, %v1451_v11 }
 0x16c   : > { %v1453_v46 = vpop.f32.mrf.mxu0  ;;  %v1678_v48 = vpop.f32.mrf.mxu1 }
 0x16d   : > { %v4334_v53 = vadd.f32 %v1676_v43, %v1452_v0 }
 0x16e   : > { %v1456_v52 = vpop.f32.mrf.mxu0  ;;  %v1681_v57 = vpop.f32.mrf.mxu1 }
 0x16f   : > { %v1457_v58 = vadd.f32 %v4164_v36, %v1456_v52 }
 0x170   : > { %v1458_v61 = vpop.f32.mrf.mxu0  ;;  %v1683_v62 = vpop.f32.mrf.mxu1 }
 0x171   : > { %v4337_v4 = vadd.f32 %v1681_v57, %v1457_v58 }
 0x172   : > { %v1461_v5 = vpop.f32.mrf.mxu0  ;;  %v1686_v8 = vpop.f32.mrf.mxu1 }
 0x173   : > { %v1462_v10 = vadd.f32 %v4164_v36, %v1461_v5 }
 0x174   : > { %v1463_v15 = vpop.f32.mrf.mxu0  ;;  %v1688_v19 = vpop.f32.mrf.mxu1 }
 0x175   : > { %v4340_v34 = vadd.f32 %v1686_v8, %v1462_v10 }
 0x176   : > { %v1466_v40 = vpop.f32.mrf.mxu0  ;;  %v1691_v44 = vpop.f32.mrf.mxu1 }
 0x177   : > { %v1467_v45 = vadd.f32 %v4164_v36, %v1466_v40 }
 0x178   : > { %v1468_v54 = vpop.f32.mrf.mxu0  ;;  %v1693_v25 = vpop.f32.mrf.mxu1 }
 0x179   : > { %v4343_v39 = vadd.f32 %v1691_v44, %v1467_v45 }
 0x17a   : > { %v1471_v50 = vpop.f32.mrf.mxu0  ;;  %v1696_v35 = vpop.f32.mrf.mxu1 }
 0x17b   : > { %v1472_v59 = vadd.f32 %v4164_v36, %v1471_v50 }
 0x17c   : > { %v1473_v2 = vpop.f32.mrf.mxu0  ;;  %v1698_v13 = vpop.f32.mrf.mxu1 }
 0x17d   : > { %v4346_v17 = vadd.f32 %v1696_v35, %v1472_v59 }
 0x17e   : > { %v1476_v18 = vpop.f32.mrf.mxu0  ;;  %v1701_v21 = vpop.f32.mrf.mxu1 }
 0x17f   : > { %v1477_v22 = vadd.f32 %v4164_v36, %v1476_v18 }
 0x180   : > { %v1478_v27 = vpop.f32.mrf.mxu0  ;;  %v1703_v28 = vpop.f32.mrf.mxu1 }
 0x181   : > { %v4349_v7 = vadd.f32 %v1701_v21, %v1477_v22 }
 0x182   : > { %v1481_v49 = vpop.f32.mrf.mxu0  ;;  %v1706_v32 = vpop.f32.mrf.mxu1 }
 0x183   : > { %v1482_v41 = vadd.f32 %v4164_v36, %v1481_v49 }
 0x184   : > { %v1483_v33 = vpop.f32.mrf.mxu0  ;;  %v1708_v11 = vpop.f32.mrf.mxu1 }
 0x185   : > { %v4352_v43 = vadd.f32 %v1706_v32, %v1482_v41 }
 0x186   : > { %v1486_v0 = vpop.f32.mrf.mxu0  ;;  %v1711_v46 = vpop.f32.mrf.mxu1 }
 0x187   : > { %v1487_v48 = vadd.f32 %v4164_v36, %v1486_v0 }
 0x188   : > { %v1488_v52 = vpop.f32.mrf.mxu0  ;;  %v1713_v57 = vpop.f32.mrf.mxu1 }
 0x189   : > { %v4355_v58 = vadd.f32 %v1711_v46, %v1487_v48 }
 0x18a   : > { %v1491_v61 = vpop.f32.mrf.mxu0  ;;  %v1716_v62 = vpop.f32.mrf.mxu1 }
 0x18b   : > { %4769 = vst [vmem:[#allocation3_spill] sm:$0xff] %v4355_v58  ;;  %v1492_v5 = vadd.f32 %v4164_v36, %v1491_v61 }
 0x18c   : > { %v1493_v8 = vpop.f32.mrf.mxu0  ;;  %v1718_v10 = vpop.f32.mrf.mxu1 }
 0x18d   : > { %v4358_v15 = vadd.f32 %v1716_v62, %v1492_v5 }
 0x18e   : > { %v1786_v19 = vpop.f32.mrf.mxu0  ;;  %v2011_v40 = vpop.f32.mrf.mxu1 }
 0x18f   : > { %4770 = vst [vmem:[#allocation5_spill] sm:$0xff] %v4358_v15  ;;  %v1787_v44 = vadd.f32 %v1786_v19, %v4171_v51 }
 0x190   : > { %v1788_v45 = vpop.f32.mrf.mxu0  ;;  %v2013_v54 = vpop.f32.mrf.mxu1 }
 0x191   : > { %v4361_v25 = vadd.f32 %v2011_v40, %v1787_v44 }
 0x192   : > { %v1791_v50 = vpop.f32.mrf.mxu0  ;;  %v2016_v35 = vpop.f32.mrf.mxu1 }
 0x193   : > { %v1792_v59 = vadd.f32 %v1791_v50, %v4178_v3 }
 0x194   : > { %v1793_v2 = vpop.f32.mrf.mxu0  ;;  %v2018_v13 = vpop.f32.mrf.mxu1 }
 0x195   : > { %v4364_v18 = vadd.f32 %v2016_v35, %v1792_v59 }
 0x196   : > { %v1796_v36 = vpop.f32.mrf.mxu0  ;;  %v2021_v21 = vpop.f32.mrf.mxu1 }
 0x197   : > { %v1797_v22 = vadd.f32 %v1796_v36, %v4185_v29 }
 0x198   : > { %v1798_v27 = vpop.f32.mrf.mxu0  ;;  %v2023_v28 = vpop.f32.mrf.mxu1 }
 0x199   : > { %v4367_v49 = vadd.f32 %v2021_v21, %v1797_v22 }
 0x19a   : > { %v1801_v51 = vpop.f32.mrf.mxu0  ;;  %v2026_v32 = vpop.f32.mrf.mxu1 }
 0x19b   : > { %v1802_v41 = vadd.f32 %v1801_v51, %v4192_v6 }
 0x19c   : > { %v1803_v33 = vpop.f32.mrf.mxu0  ;;  %v2028_v11 = vpop.f32.mrf.mxu1 }
 0x19d   : > { %v4370_v0 = vadd.f32 %v2026_v32, %v1802_v41 }
 0x19e   : > { %v1806_v3 = vpop.f32.mrf.mxu0  ;;  %v2031_v46 = vpop.f32.mrf.mxu1 }
 0x19f   : > { %v1807_v48 = vadd.f32 %v1806_v3, %v4199_v16 }
 0x1a0   : > { %v1808_v52 = vpop.f32.mrf.mxu0  ;;  %v2033_v57 = vpop.f32.mrf.mxu1 }
 0x1a1   : > { %v4373_v61 = vadd.f32 %v2031_v46, %v1807_v48 }
 0x1a2   : > { %v1811_v29 = vpop.f32.mrf.mxu0  ;;  %v2036_v62 = vpop.f32.mrf.mxu1 }
 0x1a3   : > { %v1812_v5 = vadd.f32 %v1811_v29, %v4206_v31 }
 0x1a4   : > { %v1813_v8 = vpop.f32.mrf.mxu0  ;;  %v2038_v10 = vpop.f32.mrf.mxu1 }
 0x1a5   : > { %v4376_v19 = vadd.f32 %v2036_v62, %v1812_v5 }
 0x1a6   : > { %v1816_v6 = vpop.f32.mrf.mxu0  ;;  %v2041_v40 = vpop.f32.mrf.mxu1 }
 0x1a7   : > { %v1817_v44 = vadd.f32 %v1816_v6, %v4213_v47 }
 0x1a8   : > { %v1818_v45 = vpop.f32.mrf.mxu0  ;;  %v2043_v54 = vpop.f32.mrf.mxu1 }
 0x1a9   : > { %v4379_v50 = vadd.f32 %v2041_v40, %v1817_v44 }
 0x1aa   : > { %v1821_v16 = vpop.f32.mrf.mxu0  ;;  %v2046_v35 = vpop.f32.mrf.mxu1 }
 0x1ab   : > { %v1822_v59 = vadd.f32 %v1821_v16, %v4220_v63 }
 0x1ac   : > { %v1823_v2 = vpop.f32.mrf.mxu0  ;;  %v2048_v13 = vpop.f32.mrf.mxu1 }
 0x1ad   : > { %v4382_v36 = vadd.f32 %v2046_v35, %v1822_v59 }
 0x1ae   : > { %v1826_v31 = vpop.f32.mrf.mxu0  ;;  %v2051_v21 = vpop.f32.mrf.mxu1 }
 0x1af   : > { %v1827_v22 = vadd.f32 %v1826_v31, %v4227_v30 }
 0x1b0   : > { %v1828_v27 = vpop.f32.mrf.mxu0  ;;  %v2053_v28 = vpop.f32.mrf.mxu1 }
 0x1b1   : > { %v4385_v51 = vadd.f32 %v2051_v21, %v1827_v22 }
 0x1b2   : > { %v1831_v47 = vpop.f32.mrf.mxu0  ;;  %v2056_v32 = vpop.f32.mrf.mxu1 }
 0x1b3   : > { %v1832_v41 = vadd.f32 %v1831_v47, %v4234_v1 }
 0x1b4   : > { %v1833_v33 = vpop.f32.mrf.mxu0  ;;  %v2058_v11 = vpop.f32.mrf.mxu1 }
 0x1b5   : > { %v4388_v3 = vadd.f32 %v2056_v32, %v1832_v41 }
 0x1b6   : > { %v1836_v63 = vpop.f32.mrf.mxu0  ;;  %v2061_v46 = vpop.f32.mrf.mxu1 }
 0x1b7   : > { %v1837_v48 = vadd.f32 %v1836_v63, %v4242_v12 }
 0x1b8   : > { %v1838_v52 = vpop.f32.mrf.mxu0  ;;  %v2063_v57 = vpop.f32.mrf.mxu1 }
 0x1b9   : > { %v4391_v29 = vadd.f32 %v2061_v46, %v1837_v48 }
 0x1ba   : > { %v1841_v30 = vpop.f32.mrf.mxu0  ;;  %v2066_v62 = vpop.f32.mrf.mxu1 }
 0x1bb   : > { %v1842_v5 = vadd.f32 %v1841_v30, %v4249_v23 }
 0x1bc   : > { %v1843_v8 = vpop.f32.mrf.mxu0  ;;  %v2068_v10 = vpop.f32.mrf.mxu1 }
 0x1bd   : > { %v4394_v6 = vadd.f32 %v2066_v62, %v1842_v5 }
 0x1be   : > { %v1846_v1 = vpop.f32.mrf.mxu0  ;;  %v2071_v40 = vpop.f32.mrf.mxu1 }
 0x1bf   : > { %v1847_v44 = vadd.f32 %v1846_v1, %v4259_v38 }
 0x1c0   : > { %v1848_v45 = vpop.f32.mrf.mxu0  ;;  %v2073_v54 = vpop.f32.mrf.mxu1 }
 0x1c1   : > { %v4397_v16 = vadd.f32 %v2071_v40, %v1847_v44 }
 0x1c2   : > { %v1851_v12 = vpop.f32.mrf.mxu0  ;;  %v2076_v35 = vpop.f32.mrf.mxu1 }
 0x1c3   : > { %4771 = vst [vmem:[#allocation8_spill] sm:$0xff] %v4397_v16  ;;  %v1852_v59 = vadd.f32 %v1851_v12, %v4270_v56 }
 0x1c4   : > { %v1853_v2 = vpop.f32.mrf.mxu0  ;;  %v2078_v13 = vpop.f32.mrf.mxu1 }
 0x1c5   : > { %v4400_v31 = vadd.f32 %v2076_v35, %v1852_v59 }
 0x1c6   : > { %v1856_v23 = vpop.f32.mrf.mxu0  ;;  %v2081_v21 = vpop.f32.mrf.mxu1 }
 0x1c7   : > { %4772 = vst [vmem:[#allocation4_spill] sm:$0xff] %v4400_v31  ;;  %v1857_v22 = vadd.f32 %v1856_v23, %v4277_v9 }
 0x1c8   : > { %v1858_v27 = vpop.f32.mrf.mxu0  ;;  %v2083_v28 = vpop.f32.mrf.mxu1 }
 0x1c9   : > { %v4403_v47 = vadd.f32 %v2081_v21, %v1857_v22 }
 0x1ca   : > { %v1861_v38 = vpop.f32.mrf.mxu0  ;;  %v2086_v32 = vpop.f32.mrf.mxu1 }
 0x1cb   : > { %4773 = vst [vmem:[#allocation7_spill] sm:$0xff] %v4403_v47  ;;  %v1862_v41 = vadd.f32 %v1861_v38, %v4284_v55 }
 0x1cc   : > { %v1863_v33 = vpop.f32.mrf.mxu0  ;;  %v2088_v11 = vpop.f32.mrf.mxu1 }
 0x1cd   : > { %v4406_v63 = vadd.f32 %v2086_v32, %v1862_v41 }
 0x1ce   : > { %v1866_v56 = vpop.f32.mrf.mxu0  ;;  %v2091_v46 = vpop.f32.mrf.mxu1 }
 0x1cf   : > { %4774 = vst [vmem:[#allocation11_spill] sm:$0xff] %v4406_v63  ;;  %v1867_v48 = vadd.f32 %v1866_v56, %v4291_v24 }
 0x1d0   : > { %v1868_v52 = vpop.f32.mrf.mxu0  ;;  %v2093_v57 = vpop.f32.mrf.mxu1 }
 0x1d1   : > { %v4409_v30 = vadd.f32 %v2091_v46, %v1867_v48 }
 0x1d2   : > { %v1871_v9 = vpop.f32.mrf.mxu0  ;;  %v2096_v62 = vpop.f32.mrf.mxu1 }
 0x1d4   : > { %v1873_v5 = vpop.f32.mrf.mxu0  ;;  %v2098_v8 = vpop.f32.mrf.mxu1 }
 0x1d6   : > { %v1876_v10 = vpop.f32.mrf.mxu0  ;;  %v4411_v1 = vpop.f32.mrf.mxu1 }
 0x1d7   : > { %v1877_v15 = vadd.f32 %v1876_v10, %v4305_v60 }
 0x1d8   : > { %v1878_v55 = vpop.f32.mrf.mxu0  ;;  %v2103_v40 = vpop.f32.mrf.mxu1 }
 0x1d9   : > { %v2102_v10 = vadd.f32 %v4411_v1, %v1877_v15 }
 0x1da   : > { %v1881_v44 = vpop.f32.mrf.mxu0  ;;  %v4413_v45 = vpop.f32.mrf.mxu1 }
 0x1dc   : > { %v1883_v54 = vpop.f32.mrf.mxu0  ;;  %v2108_v12 = vpop.f32.mrf.mxu1 }
 0x1de   : > { %v4415_v35 = vpop.f32.mrf.mxu0  ;;  %v4417_v24 = vpop.f32.mrf.mxu1 }
 0x1df   : > { %v1887_v15 = vadd.f32 %v4415_v35, %v4318_v14 }
 0x1e0   : > { %v1888_v59 = vpop.f32.mrf.mxu0  ;;  %v2113_v2 = vpop.f32.mrf.mxu1 }
 0x1e2   : > { %v1891_v13 = vpop.f32.mrf.mxu0  ;;  %v4419_v23 = vpop.f32.mrf.mxu1 }
 0x1e4   : > { %v1893_v21 = vpop.f32.mrf.mxu0  ;;  %v2118_v22 = vpop.f32.mrf.mxu1 }
 0x1e6   : > { %v4421_v27 = vpop.f32.mrf.mxu0  ;;  %v4423_v28 = vpop.f32.mrf.mxu1 }
 0x1e8   : > { %v1898_v38 = vpop.f32.mrf.mxu0  ;;  %v2123_v32 = vpop.f32.mrf.mxu1 }
 0x1ea   : > { %v4425_v41 = vpop.f32.mrf.mxu0  ;;  %v4427_v33 = vpop.f32.mrf.mxu1 }
 0x1ec   : > { %v1903_v11 = vpop.f32.mrf.mxu0  ;;  %v2128_v56 = vpop.f32.mrf.mxu1 }
 0x1ee   : > { %v4429_v46 = vpop.f32.mrf.mxu0  ;;  %v4431_v48 = vpop.f32.mrf.mxu1 }
 0x1f0   : > { %v1908_v52 = vpop.f32.mrf.mxu0  ;;  %v2133_v57 = vpop.f32.mrf.mxu1 }
 0x1f2   : > { %v4433_v5 = vpop.f32.mrf.mxu0  ;;  %v4435_v8 = vpop.f32.mrf.mxu1 }
 0x1f4   : > { %v1913_v55 = vpop.f32.mrf.mxu0  ;;  %v2138_v40 = vpop.f32.mrf.mxu1 }
 0x1f6   : > { %v4437_v54 = vpop.f32.mrf.mxu0  ;;  %v4439_v12 = vpop.f32.mrf.mxu1 }
 0x1f8   : > { %v1918_v59 = vpop.f32.mrf.mxu0  ;;  %v2143_v2 = vpop.f32.mrf.mxu1 }
 0x1fa   : > { %v4441_v21 = vpop.f32.mrf.mxu0  ;;  %v4443_v22 = vpop.f32.mrf.mxu1 }
 0x1fc   : > { %v1923_v38 = vpop.f32.mrf.mxu0  ;;  %v2148_v32 = vpop.f32.mrf.mxu1 }
 0x1fd   : > { %v1872_v32 = vadd.f32 %v1871_v9, %v4298_v37 }
 0x1fe   : > { %v4445_v11 = vpop.f32.mrf.mxu0  ;;  %v4447_v56 = vpop.f32.mrf.mxu1 }
 0x1ff   : > { %4775 = vst [vmem:[#allocation6_spill] sm:$0xff] %v4447_v56  ;;  %v2097_v56 = vadd.f32 %v2096_v62, %v1872_v32 }
 0x200   : > { %v1928_v52 = vpop.f32.mrf.mxu0  ;;  %v2153_v57 = vpop.f32.mrf.mxu1 }
 0x202   : > { %v4449_v55 = vpop.f32.mrf.mxu0  ;;  %v4451_v40 = vpop.f32.mrf.mxu1 }
 0x204   : > { %v1933_v47 = vpop.f32.mrf.mxu0  ;;  %v2158_v59 = vpop.f32.mrf.mxu1 }
 0x205   : > { %v1882_v47 = vadd.f32 %v1881_v44, %v4312_v20 }
 0x206   : > { %v4453_v2 = vpop.f32.mrf.mxu0  ;;  %v4455_v63 = vpop.f32.mrf.mxu1 }
 0x207   : > { %v2107_v44 = vadd.f32 %v4413_v45, %v1882_v47 }
 0x208   : > { %v1938_v16 = vpop.f32.mrf.mxu0  ;;  %v2163_v38 = vpop.f32.mrf.mxu1 }
 0x20a   : > { %v4458_v58 = vpop.f32.mrf.mxu0  ;;  %v4460_v31 = vpop.f32.mrf.mxu1 }
 0x20c   : > { %v1943_v52 = vpop.f32.mrf.mxu0  ;;  %v2168_v57 = vpop.f32.mrf.mxu1 }
 0x20e   : > { %v2955_v37 = vpop.f32.mrf.mxu0  ;;  %v2979_v16 = vpop.f32.mrf.mxu1 }
 0x20f   : > { %v2242_v9 = vadd.f32 %v2955_v37, %v4364_v18  ;;  %v4471_v59 = vadd.f32 %v2979_v16, %v2097_v56  ;;  %v1892_v18 = vadd.f32 %v1891_v13, %v4325_v26 }
 0x210   : > { %v2236_v62 = vpop.f32.mrf.mxu0  ;;  %v2316_v38 = vpop.f32.mrf.mxu1 }
 0x211   : > { %2396 = vst [vmem:[%s4468_s11 + $0x8] sm:$0xff] %v2242_v9  ;;  %2412 = vst [vmem:[%s4468_s11 + $0x88] sm:$0xff] %v4471_v59  ;;  %v2237_v60 = vadd.f32 %v2236_v62, %v4361_v25  ;;  %v4478_v20 = vadd.f32 %v2316_v38, %v4409_v30  ;;  %v2466_v52 = vmul.f32 %v2242_v9, %v2242_v9 }
 0x212   : > { %v2958_v56 = vpop.f32.mrf.mxu0  ;;  %v2982_v32 = vpop.f32.mrf.mxu1  ;;  %v2117_v16 = vadd.f32 %v4419_v23, %v1892_v18  ;;  %v2112_v38 = vadd.f32 %v4417_v24, %v1887_v15  ;;  %v1897_v23 = vadd.f32 %v4421_v27, %v4331_v42 }
 0x213   : > { %2395 = vst [vmem:[%s4468_s11] sm:$0xff] %v2237_v60  ;;  %v2427_v57 = vadd.f32 %v2242_v9, %v2237_v60  ;;  %v2465_v37 = vmul.f32 %v2237_v60, %v2237_v60  ;;  %2411 = vst [vmem:[%s4468_s11 + $0x80] sm:$0xff] %v4478_v20  ;;  %v2252_v25 = vadd.f32 %v2958_v56, %v4370_v0 }
 0x214   : > { %v4489_v30 = vadd.f32 %v2982_v32, %v2107_v44  ;;  %v2246_v1 = vpop.f32.mrf.mxu0  ;;  %v2326_v26 = vpop.f32.mrf.mxu1  ;;  %v1902_v9 = vadd.f32 %v4425_v41, %v4334_v53 }
 0x215   : > { %v2497_v45 = vadd.f32 %v2466_v52, %v2465_v37  ;;  %2398 = vst [vmem:[%s4468_s11 + $0x18] sm:$0xff] %v2252_v25  ;;  %v2247_v13 = vadd.f32 %v2246_v1, %v4367_v49  ;;  %v4493_v47 = vadd.f32 %v2326_v26, %v2102_v10  ;;  %v2468_v10 = vmul.f32 %v2252_v25, %v2252_v25 }
 0x216   : > { %2414 = vst [vmem:[%s4468_s11 + $0x98] sm:$0xff] %v4489_v30  ;;  %v2961_v14 = vpop.f32.mrf.mxu0  ;;  %v2985_v0 = vpop.f32.mrf.mxu1  ;;  %v2127_v32 = vadd.f32 %v4427_v33, %v1902_v9  ;;  %v1907_v33 = vadd.f32 %v4429_v46, %v4337_v4 }
 0x217   : > { %2397 = vst [vmem:[%s4468_s11 + $0x10] sm:$0xff] %v2247_v13  ;;  %v2428_v35 = vadd.f32 %v2427_v57, %v2247_v13  ;;  %v2467_v62 = vmul.f32 %v2247_v13, %v2247_v13  ;;  %2413 = vst [vmem:[%s4468_s11 + $0x90] sm:$0xff] %v4493_v47  ;;  %v2262_v49 = vadd.f32 %v2961_v14, %v4376_v19 }
 0x218   : > { %v4507_v53 = vadd.f32 %v2985_v0, %v2117_v16  ;;  %v2256_v41 = vpop.f32.mrf.mxu0  ;;  %v2336_v60 = vpop.f32.mrf.mxu1  ;;  %v1912_v19 = vadd.f32 %v4433_v5, %v4340_v34 }
 0x219   : > { %v2498_v44 = vadd.f32 %v2497_v45, %v2467_v62  ;;  %2400 = vst [vmem:[%s4468_s11 + $0x28] sm:$0xff] %v2262_v49  ;;  %v2257_v18 = vadd.f32 %v2256_v41, %v4373_v61  ;;  %v2429_v56 = vadd.f32 %v2428_v35, %v2252_v25  ;;  %v4516_v24 = vadd.f32 %v2336_v60, %v2112_v38 }
 0x21a   : > { %2416 = vst [vmem:[%s4468_s11 + $0xa8] sm:$0xff] %v4507_v53  ;;  %v2964_v42 = vpop.f32.mrf.mxu0  ;;  %v2988_v27 = vpop.f32.mrf.mxu1  ;;  %v2122_v25 = vadd.f32 %v4423_v28, %v1897_v23  ;;  %v2470_v1 = vmul.f32 %v2262_v49, %v2262_v49  ;;  %v1922_v28 = vadd.f32 %v4441_v21, %v4346_v17  ;;  %v2132_v35 = vadd.f32 %v4431_v48, %v1907_v33 }
 0x21b   : > { %2399 = vst [vmem:[%s4468_s11 + $0x20] sm:$0xff] %v2257_v18  ;;  %v2430_v52 = vadd.f32 %v2429_v56, %v2257_v18  ;;  %v2469_v57 = vmul.f32 %v2257_v18, %v2257_v18  ;;  %v2499_v37 = vadd.f32 %v2498_v44, %v2468_v10  ;;  %v2272_v61 = vadd.f32 %v2964_v42, %v4382_v36 }
 0x21c   : > { %2415 = vst [vmem:[%s4468_s11 + $0xa0] sm:$0xff] %v4516_v24  ;;  %v4525_v34 = vadd.f32 %v2988_v27, %v2127_v32  ;;  %v2266_v5 = vpop.f32.mrf.mxu0  ;;  %v2346_v15 = vpop.f32.mrf.mxu1  ;;  %v2137_v36 = vadd.f32 %v4435_v8, %v1912_v19  ;;  %v1917_v8 = vadd.f32 %v4437_v54, %v4343_v39  ;;  %v1932_v48 = vadd.f32 %v4449_v55, %v4352_v43 }
 0x21d   : > { %v2500_v26 = vadd.f32 %v2499_v37, %v2469_v57  ;;  %2402 = vst [vmem:[%s4468_s11 + $0x38] sm:$0xff] %v2272_v61  ;;  %v2267_v45 = vadd.f32 %v2266_v5, %v4379_v50  ;;  %v2431_v13 = vadd.f32 %v2430_v52, %v2262_v49  ;;  %v4534_v4 = vadd.f32 %v2346_v15, %v2122_v25  ;;  %v4777_v5 = vld [vmem:[#allocation4_spill] sm:$0xff]  ;;  %v4778_v15 = vld [vmem:[#allocation6_spill] sm:$0xff] }
 0x21e   : > { %2418 = vst [vmem:[%s4468_s11 + $0xb8] sm:$0xff] %v4525_v34  ;;  %v2967_v46 = vpop.f32.mrf.mxu0  ;;  %v2991_v16 = vpop.f32.mrf.mxu1  ;;  %v2472_v49 = vmul.f32 %v2272_v61, %v2272_v61  ;;  %v2142_v56 = vadd.f32 %v4439_v12, %v1917_v8  ;;  %v4776_v12 = vld [vmem:[#allocation5_spill] sm:$0xff] }
 0x21f   : > { %2401 = vst [vmem:[%s4468_s11 + $0x30] sm:$0xff] %v2267_v45  ;;  %v2432_v9 = vadd.f32 %v2431_v13, %v2267_v45  ;;  %v2471_v14 = vmul.f32 %v2267_v45, %v2267_v45  ;;  %v2501_v0 = vadd.f32 %v2500_v26, %v2470_v1  ;;  %v2282_v50 = vadd.f32 %v2967_v46, %v4388_v3  ;;  %v4780_v46 = vld [vmem:[#allocation8_spill] sm:$0xff] }
 0x220   : > { %2417 = vst [vmem:[%s4468_s11 + $0xb0] sm:$0xff] %v4534_v4  ;;  %v4543_v17 = vadd.f32 %v2991_v16, %v2137_v36  ;;  %v2276_v21 = vpop.f32.mrf.mxu0  ;;  %v2356_v62 = vpop.f32.mrf.mxu1  ;;  %v2147_v3 = vadd.f32 %v4443_v22, %v1922_v28  ;;  %v1927_v22 = vadd.f32 %v4445_v11, %v4349_v7  ;;  %v1942_v57 = vadd.f32 %v4458_v58, %v4776_v12 }
 0x221   : > { %v2502_v38 = vadd.f32 %v2501_v0, %v2471_v14  ;;  %2404 = vst [vmem:[%s4468_s11 + $0x48] sm:$0xff] %v2282_v50  ;;  %v2277_v23 = vadd.f32 %v2276_v21, %v4385_v51  ;;  %v2433_v41 = vadd.f32 %v2432_v9, %v2272_v61  ;;  %v4552_v39 = vadd.f32 %v2356_v62, %v2132_v35  ;;  %v4781_v62 = vld [vmem:[#allocation11_spill] sm:$0xff] }
 0x222   : > { %2420 = vst [vmem:[%s4468_s11 + $0xc8] sm:$0xff] %v4543_v17  ;;  %v2970_v54 = vpop.f32.mrf.mxu0  ;;  %v2994_v60 = vpop.f32.mrf.mxu1  ;;  %v2474_v19 = vmul.f32 %v2282_v50, %v2282_v50  ;;  %v2152_v1 = vadd.f32 %v4778_v15, %v1927_v22  ;;  %v2167_v14 = vadd.f32 %v4460_v31, %v1942_v57  ;;  %v2483_v12 = vmul.f32 %v4493_v47, %v4493_v47 }
 0x223   : > { %2403 = vst [vmem:[%s4468_s11 + $0x40] sm:$0xff] %v2277_v23  ;;  %v2434_v10 = vadd.f32 %v2433_v41, %v2277_v23  ;;  %v2473_v44 = vmul.f32 %v2277_v23, %v2277_v23  ;;  %v2503_v18 = vadd.f32 %v2502_v38, %v2472_v49  ;;  %v2292_v51 = vadd.f32 %v2970_v54, %v4394_v6  ;;  %v4782_v54 = vld [vmem:[#allocation7_spill] sm:$0xff] }
 0x224   : > { %2419 = vst [vmem:[%s4468_s11 + $0xc0] sm:$0xff] %v4552_v39  ;;  %v4561_v43 = vadd.f32 %v2994_v60, %v2147_v3  ;;  %v2286_v55 = vpop.f32.mrf.mxu0  ;;  %v2366_v32 = vpop.f32.mrf.mxu1  ;;  %v2157_v6 = vadd.f32 %v4451_v40, %v1932_v48  ;;  %v4779_v40 = vld [vmem:[#allocation3_spill] sm:$0xff] }
 0x225   : > { %v2504_v42 = vadd.f32 %v2503_v18, %v2473_v44  ;;  %2406 = vst [vmem:[%s4468_s11 + $0x58] sm:$0xff] %v2292_v51  ;;  %v2287_v27 = vadd.f32 %v2286_v55, %v4391_v29  ;;  %v2435_v52 = vadd.f32 %v2434_v10, %v2282_v50  ;;  %v4570_v7 = vadd.f32 %v2366_v32, %v2142_v56 }
 0x226   : > { %2422 = vst [vmem:[%s4468_s11 + $0xd8] sm:$0xff] %v4561_v43  ;;  %v2973_v11 = vpop.f32.mrf.mxu0  ;;  %v2997_v37 = vpop.f32.mrf.mxu1  ;;  %v1937_v58 = vadd.f32 %v4453_v2, %v4779_v40  ;;  %v2476_v36 = vmul.f32 %v2292_v51, %v2292_v51  ;;  %v2481_v32 = vmul.f32 %v4478_v20, %v4478_v20 }
 0x227   : > { %2405 = vst [vmem:[%s4468_s11 + $0x50] sm:$0xff] %v2287_v27  ;;  %v2436_v61 = vadd.f32 %v2435_v52, %v2287_v27  ;;  %v2475_v25 = vmul.f32 %v2287_v27, %v2287_v27  ;;  %v2505_v33 = vadd.f32 %v2504_v42, %v2474_v19  ;;  %v2302_v29 = vadd.f32 %v2973_v11, %v4777_v5 }
 0x228   : > { %2421 = vst [vmem:[%s4468_s11 + $0xd0] sm:$0xff] %v4570_v7  ;;  %v4579_v26 = vadd.f32 %v2997_v37, %v2157_v6  ;;  %v2296_v45 = vpop.f32.mrf.mxu0  ;;  %v2376_v13 = vpop.f32.mrf.mxu1  ;;  %v2162_v38 = vadd.f32 %v4455_v63, %v1937_v58  ;;  %v2482_v27 = vmul.f32 %v4471_v59, %v4471_v59  ;;  %v2484_v37 = vmul.f32 %v4489_v30, %v4489_v30 }
 0x229   : > { %v2506_v28 = vadd.f32 %v2505_v33, %v2475_v25  ;;  %2408 = vst [vmem:[%s4468_s11 + $0x68] sm:$0xff] %v2302_v29  ;;  %v2297_v16 = vadd.f32 %v2296_v45, %v4780_v46  ;;  %v2437_v9 = vadd.f32 %v2436_v61, %v2292_v51  ;;  %v4586_v0 = vadd.f32 %v2376_v13, %v2152_v1 }
 0x22a   : > { %2424 = vst [vmem:[%s4468_s11 + $0xe8] sm:$0xff] %v4579_v26  ;;  %v2976_v2 = vpop.f32.mrf.mxu0  ;;  %v3000_v50 = vpop.f32.mrf.mxu1  ;;  %v2478_v3 = vmul.f32 %v2302_v29, %v2302_v29 }
 0x22b   : > { %2407 = vst [vmem:[%s4468_s11 + $0x60] sm:$0xff] %v2297_v16  ;;  %v2438_v35 = vadd.f32 %v2437_v9, %v2297_v16  ;;  %v2477_v8 = vmul.f32 %v2297_v16, %v2297_v16  ;;  %v2507_v21 = vadd.f32 %v2506_v28, %v2476_v36  ;;  %v2312_v49 = vadd.f32 %v2976_v2, %v4781_v62 }
 0x22c   : > { %2423 = vst [vmem:[%s4468_s11 + $0xe0] sm:$0xff] %v4586_v0  ;;  %v4593_v31 = vadd.f32 %v3000_v50, %v2167_v14  ;;  %v2306_v23 = vpop.f32.mrf.mxu0  ;;  %v2386_v41 = vpop.f32.mrf.mxu1 }
 0x22d   : > { %v2508_v48 = vadd.f32 %v2507_v21, %v2477_v8  ;;  %2410 = vst [vmem:[%s4468_s11 + $0x78] sm:$0xff] %v2312_v49  ;;  %v2307_v60 = vadd.f32 %v2306_v23, %v4782_v54  ;;  %v2439_v10 = vadd.f32 %v2438_v35, %v2302_v29  ;;  %v2387_v44 = vadd.f32 %v2386_v41, %v2162_v38 }
 0x22e   : > { %2426 = vst [vmem:[%s4468_s11 + $0xf8] sm:$0xff] %v4593_v31  ;;  %v2480_v56 = vmul.f32 %v2312_v49, %v2312_v49 }
 0x22f   : > { %2409 = vst [vmem:[%s4468_s11 + $0x70] sm:$0xff] %v2307_v60  ;;  %v2440_v18 = vadd.f32 %v2439_v10, %v2307_v60  ;;  %v2479_v51 = vmul.f32 %v2307_v60, %v2307_v60  ;;  %v2509_v63 = vadd.f32 %v2508_v48, %v2478_v3  ;;  %2425 = vst [vmem:[%s4468_s11 + $0xf0] sm:$0xff] %v2387_v44 }
 0x230   : > { %v2495_v62 = vmul.f32 %v2387_v44, %v2387_v44 }
 0x231   : > { %v2441_v22 = vadd.f32 %v2440_v18, %v2312_v49  ;;  %v2510_v55 = vadd.f32 %v2509_v63, %v2479_v51 }
 0x233   : > { %v2442_v19 = vadd.f32 %v2441_v22, %v4478_v20  ;;  %v2511_v42 = vadd.f32 %v2510_v55, %v2480_v56  ;;  %v2485_v20 = vmul.f32 %v4516_v24, %v4516_v24 }
 0x235   : > { %v2443_v52 = vadd.f32 %v2442_v19, %v4471_v59  ;;  %v2512_v6 = vadd.f32 %v2511_v42, %v2481_v32  ;;  %v2486_v59 = vmul.f32 %v4507_v53, %v4507_v53 }
 0x237   : > { %v2444_v57 = vadd.f32 %v2443_v52, %v4493_v47  ;;  %v2513_v11 = vadd.f32 %v2512_v6, %v2482_v27  ;;  %v2487_v47 = vmul.f32 %v4534_v4, %v4534_v4 }
 0x239   : > { %v2445_v61 = vadd.f32 %v2444_v57, %v4489_v30  ;;  %v2514_v25 = vadd.f32 %v2513_v11, %v2483_v12  ;;  %v2488_v30 = vmul.f32 %v4525_v34, %v4525_v34 }
 0x23b   : > { %v2446_v33 = vadd.f32 %v2445_v61, %v4516_v24  ;;  %v2515_v5 = vadd.f32 %v2514_v25, %v2484_v37  ;;  %v2489_v24 = vmul.f32 %v4552_v39, %v4552_v39 }
 0x23d   : > { %v2447_v29 = vadd.f32 %v2446_v33, %v4507_v53  ;;  %v2516_v15 = vadd.f32 %v2515_v5, %v2485_v20  ;;  %v2490_v53 = vmul.f32 %v4543_v17, %v4543_v17 }
 0x23f   : > { %v2517_v1 = vadd.f32 %v2516_v15, %v2486_v59  ;;  %v2448_v40 = vadd.f32 %v2447_v29, %v4534_v4  ;;  %v2491_v4 = vmul.f32 %v4570_v7, %v4570_v7 }
 0x241   : > { %v2449_v58 = vadd.f32 %v2448_v40, %v4525_v34  ;;  %v2518_v45 = vadd.f32 %v2517_v1, %v2487_v47  ;;  %v2492_v34 = vmul.f32 %v4561_v43, %v4561_v43 }
 0x243   : > { %v2450_v13 = vadd.f32 %v2449_v58, %v4552_v39  ;;  %v2519_v36 = vadd.f32 %v2518_v45, %v2488_v30  ;;  %v2493_v39 = vmul.f32 %v4586_v0, %v4586_v0 }
 0x245   : > { %v2451_v28 = vadd.f32 %v2450_v13, %v4543_v17  ;;  %v2520_v46 = vadd.f32 %v2519_v36, %v2489_v24  ;;  %v2494_v17 = vmul.f32 %v4579_v26, %v4579_v26 }
 0x247   : > { %v2452_v16 = vadd.f32 %v2451_v28, %v4570_v7  ;;  %v2521_v9 = vadd.f32 %v2520_v46, %v2490_v53 }
 0x249   : > { %v2453_v14 = vadd.f32 %v2452_v16, %v4561_v43  ;;  %v2522_v2 = vadd.f32 %v2521_v9, %v2491_v4  ;;  %v2496_v43 = vmul.f32 %v4593_v31, %v4593_v31 }
 0x24b   : > { %v2454_v50 = vadd.f32 %v2453_v14, %v4586_v0  ;;  %v2523_v35 = vadd.f32 %v2522_v2, %v2492_v34 }
 0x24d   : > { %v2455_v8 = vadd.f32 %v2454_v50, %v4579_v26  ;;  %v2524_v7 = vadd.f32 %v2523_v35, %v2493_v39 }
 0x24f   : > { %v2456_v21 = vadd.f32 %v2455_v8, %v2387_v44  ;;  %v2525_v49 = vadd.f32 %v2524_v7, %v2494_v17 }
 0x251   : > { %v2457_v38 = vadd.f32 %v2456_v21, %v4593_v31  ;;  %v2526_v23 = vadd.f32 %v2525_v49, %v2495_v62 }
 0x253   : > { %v2458_v41 = vrot.slane %v2457_v38, 4  ;;  %v2527_v3 = vadd.f32 %v2526_v23, %v2496_v43 }
 0x255   : > { %v2459_v0 = vadd.f32 %v2458_v41, %v2457_v38  ;;  %v2528_v48 = vrot.slane %v2527_v3, 4 }
 0x257   : > { %v2460_v54 = vrot.slane %v2459_v0, 2  ;;  %v2529_v60 = vadd.f32 %v2528_v48, %v2527_v3 }
 0x259   : > { %v2461_v10 = vadd.f32 %v2460_v54, %v2459_v0  ;;  %v2530_v18 = vrot.slane %v2529_v60, 2 }
 0x25b   : > { %v2462_v26 = vrot.slane %v2461_v10, 1  ;;  %v2531_v51 = vadd.f32 %v2530_v18, %v2529_v60 }
 0x25d   : > { %v2463_v44 = vadd.f32 %v2462_v26, %v2461_v10  ;;  %v2532_v63 = vrot.slane %v2531_v51, 1 }
 0x25f   : > { %2464 = vst [vmem:[%s252_s19] sm:$0x1] %v2463_v44  ;;  %v2533_v31 = vadd.f32 %v2532_v63, %v2531_v51 }
 0x261   : > { %2534 = vst [vmem:[%s252_s19 + $0x1] sm:$0x1] %v2533_v31 }
 0x262 PF: > { %s15_s17 = sadd.s32 1, %s3081_s17   ;;  %s4783_s15 = smov %s3077_s16 }
 0x263   : > { %p12_p5 = scmp.ge.s32.totalorder %s15_s17, 4   ;;  %s4784_s16 = smov %s4786_s18 }
 0x265   :  { %14 = sbr.rel (!%p12_p5) target bundleno = 2 (0x2), region = 76 }

</bundles_post_ra>
